<compile_context>
chip_gen: v5e
topology: v5e:2x2
jax: 0.10.0
libtpu: 0.0.40
codegen_flags: <defaults>
</compile_context>

<pallas_src>
import jax
import jax.numpy as jnp
from jax import lax
from jax.experimental import pallas as pl
from jax.experimental.pallas import tpu as pltpu


def _sigmoid(x):
    # EUP-only sigmoid (tanh), avoids the exact f32 divide of 1/(1+exp(-x)).
    return 0.5 * (jnp.tanh(0.5 * x) + 1.0)


# --------------------------------------------------------------------------
# Fused kernel: sentence-level LSTM + per-sentence attention, context
# LSTMCell, greedy prediction -> class-embedding feedback, log_softmax.
# --------------------------------------------------------------------------
def han_kernel(lens_ref, xemb_ref,
               wih_s_ref, whh_s_ref, b_s_ref,
               w_in_ref, b_in_ref, w_co_ref, b_co_ref, b_att_ref,
               u_w_ref, u_b_ref,
               wih_c_ref, whh_c_ref, b_c_ref,
               w_out_ref, b_out_ref, emby_ref,
               tag_ref, senvec_scr):
    S, T, E = xemb_ref.shape
    Hs = whh_s_ref.shape[0]
    Hc = whh_c_ref.shape[0]
    Ey = w_in_ref.shape[1]
    C = w_out_ref.shape[1]
    f32 = jnp.float32

    # ---------------- Phase 1: sentence-level LSTM (batched over S) --------
    xe = xemb_ref[...]                        # (S, T, E), tiny, load once
    wih_s = wih_s_ref[...]
    whh_s = whh_s_ref[...]
    b_s = b_s_ref[...]

    h = jnp.zeros((S, Hs), f32)
    c = jnp.zeros((S, Hs), f32)
    for t in range(T):                        # fully unrolled (T is static)
        xt = xe[:, t, :]                      # (S, E) static slice of a value
        gates = (jnp.dot(xt, wih_s, preferred_element_type=f32)
                 + jnp.dot(h, whh_s, preferred_element_type=f32)
                 + b_s)                       # (S, 4Hs)
        sg = _sigmoid(gates)                  # activations on full gate vreg
        th = jnp.tanh(gates)
        c = sg[:, Hs:2 * Hs] * c + sg[:, 0:Hs] * th[:, 2 * Hs:3 * Hs]
        h = sg[:, 3 * Hs:4 * Hs] * jnp.tanh(c)
        senvec_scr[t] = h                     # time-major, leading-axis store
    # (running past each sentence's length is harmless: only rows < len are
    #  ever read through the attention mask, and the LSTM is causal.)

    sv_all = senvec_scr[...]                  # (T, S, Hs)

    # ------- Hoisted loop-invariant attention projection (one matmul) ------
    b_fold = b_in_ref[...] + b_co_ref[...] + b_att_ref[...]        # (1, Ey)
    t1_flat = (jnp.dot(xe.reshape(S * T, E), w_in_ref[...],
                       preferred_element_type=f32) + b_fold)       # (S*T, Ey)

    w_co = w_co_ref[...]
    u_w = u_w_ref[...]                        # (1, Ey) row  (PyTorch layout)
    u_b = u_b_ref[...]                        # (1, 1)
    wih_c = wih_c_ref[...]
    whh_c = whh_c_ref[...]
    b_c = b_c_ref[...]
    w_out = w_out_ref[...]
    b_out = b_out_ref[...]
    emby = emby_ref[...]                      # (C, Ey)

    t_idx = lax.broadcasted_iota(jnp.int32, (T, 1), 0)
    c_idx = lax.broadcasted_iota(jnp.int32, (1, C), 1)
    cls_idx = lax.broadcasted_iota(jnp.int32, (C, 1), 0)

    hx = jnp.zeros((1, Hc), f32)
    cx = jnp.zeros((1, Hc), f32)
    eyt = jnp.zeros((1, Ey), f32)
    logits_rows = []

    # ---------------- Phase 2: serial per-sentence decoder loop ------------
    for i in range(S):                        # fully unrolled (S is static)
        L = lens_ref[i]                       # SMEM scalar
        mask = (t_idx < L).astype(f32)        # (T, 1)
        sv = sv_all[:, i, :]                  # (T, Hs)

        if i == 0:
            # uniform attention over the first L tokens (guard L == 0)
            inv_l = 1.0 / jnp.maximum(L, 1).astype(f32)
            att = mask * inv_l
        else:
            t1 = t1_flat[i * T:(i + 1) * T, :]                       # (T, Ey)
            t2 = jnp.dot(hx, w_co, preferred_element_type=f32)       # (1, Ey)
            a = t1 + (t2 + eyt)                                      # (T, Ey)
            # u(.) as VPU multiply + lane reduce (no MXU (T,Ey)@(Ey,1) push)
            st = jnp.tanh(jnp.sum(a * u_w, axis=-1, keepdims=True) + u_b)
            st_m = jnp.max(jnp.where(mask > 0.0, st, -1e30),
                           axis=0, keepdims=True)
            ex = jnp.exp(st - st_m) * mask
            denom = jnp.maximum(jnp.sum(ex, axis=0, keepdims=True), 1e-30)
            att = ex * pl.reciprocal(denom, approx=True)             # (T, 1)

        # sen_vec_1 = att^T @ sen_vec[i, :L, :]  -> (1, Hs)   (VPU + XLU)
        sen_vec_1 = jnp.sum(att * sv, axis=0, keepdims=True)

        # -------- context-level LSTMCell --------
        gates = (jnp.dot(sen_vec_1, wih_c, preferred_element_type=f32)
                 + jnp.dot(hx, whh_c, preferred_element_type=f32)
                 + b_c)                                              # (1, 4Hc)
        sg = _sigmoid(gates)
        th = jnp.tanh(gates)
        cx = sg[:, Hc:2 * Hc] * cx + sg[:, 0:Hc] * th[:, 2 * Hc:3 * Hc]
        hx = sg[:, 3 * Hc:4 * Hc] * jnp.tanh(cx)

        # -------- logits (reused for both prediction and final output) -----
        logits = jnp.dot(hx, w_out, preferred_element_type=f32) + b_out  # (1, C)
        logits_rows.append(logits)

        # greedy argmax (argmax(log_softmax(z)) == argmax(z); ties -> lowest
        # index) and class-embedding feedback as a VPU row-select (no MXU).
        mx = jnp.max(logits, axis=1, keepdims=True)
        pre = jnp.min(jnp.where(logits >= mx, c_idx, C),
                      axis=1, keepdims=True)                         # (1, 1)
        sel = (cls_idx == pre).astype(f32)                           # (C, 1)
        eyt = jnp.sum(sel * emby, axis=0, keepdims=True)             # (1, Ey)

    # -------- final log_softmax over the logits already computed -----------
    logits_all = jnp.concatenate(logits_rows, axis=0)                # (S, C)
    m = jnp.max(logits_all, axis=1, keepdims=True)
    lse = jnp.log(jnp.sum(jnp.exp(logits_all - m), axis=1, keepdims=True)) + m
    tag_ref[...] = logits_all - lse


# --------------------------------------------------------------------------
# Wrapper: embedding gather stays in plain JAX; everything else is one kernel.
# --------------------------------------------------------------------------
def han_forward(x, sentence_lens, params):
    x_emb = params['emb_x'][x]                         # (S, T, E)
    S, T, _ = x_emb.shape
    Hs = params['whh_s'].shape[0]
    C = params['w_out'].shape[1]

    in_specs = ([pl.BlockSpec(memory_space=pltpu.MemorySpace.SMEM)]
                + [pl.BlockSpec(memory_space=pltpu.MemorySpace.VMEM)] * 17)

    return pl.pallas_call(
        han_kernel,
        out_shape=jax.ShapeDtypeStruct((S, C), jnp.float32),
        in_specs=in_specs,
        out_specs=pl.BlockSpec(memory_space=pltpu.MemorySpace.VMEM),
        scratch_shapes=[pltpu.VMEM((T, S, Hs), jnp.float32)],
    )(sentence_lens, x_emb,
      params['wih_s'], params['whh_s'], params['b_s'],
      params['w_in'], params['b_in'], params['w_co'], params['b_co'],
      params['b_att'], params['u_w'], params['u_b'],
      params['wih_c'], params['whh_c'], params['b_c'],
      params['w_out'], params['b_out'], params['emb_y'])


def init_params(key, vocab, E, Hs, Hc, C, Ey):
    ks = jax.random.split(key, 16)

    def u(k, shape, scale=0.1):
        return jax.random.uniform(k, shape, jnp.float32, -scale, scale)

    return dict(
        emb_x=u(ks[0], (vocab, E)),
        # sentence-level LSTM (gate order i,f,g,o; b_s = bias_ih + bias_hh)
        wih_s=u(ks[1], (E, 4 * Hs)),
        whh_s=u(ks[2], (Hs, 4 * Hs)),
        b_s=u(ks[3], (1, 4 * Hs)),
        # context-level LSTMCell (b_c = bias_ih + bias_hh)
        wih_c=u(ks[4], (Hs, 4 * Hc)),
        whh_c=u(ks[5], (Hc, 4 * Hc)),
        b_c=u(ks[6], (1, 4 * Hc)),
        # output classifier
        w_out=u(ks[7], (Hc, C)),
        b_out=u(ks[8], (1, C)),
        # attention projections
        w_in=u(ks[9], (E, Ey)),
        b_in=u(ks[10], (1, Ey)),
        w_co=u(ks[11], (Hc, Ey)),
        b_co=u(ks[12], (1, Ey)),
        b_att=jnp.zeros((1, Ey), jnp.float32),   # self.b initialized to zeros
        u_w=u(ks[13], (1, Ey)),                  # PyTorch nn.Linear(Ey,1).weight layout
        u_b=u(ks[14], (1, 1)),
        # class embedding
        emb_y=u(ks[15], (C, Ey)),
    )


if __name__ == "__main__":
    vocab_size, embed_size = 50, 32
    sen_hidden, con_hidden = 32, 32
    class_num, embed_y_size = 8, 32
    S, T = 4, 8                                       # sentences, max tokens

    key = jax.random.PRNGKey(0)
    k_param, k_tok = jax.random.split(key)
    params = init_params(k_param, vocab_size, embed_size,
                         sen_hidden, con_hidden, class_num, embed_y_size)

    x = jax.random.randint(k_tok, (S, T), 0, vocab_size, dtype=jnp.int32)
    sentence_lens = jnp.array([8, 5, 7, 6], dtype=jnp.int32)

    tag_score = jax.jit(han_forward)(x, sentence_lens, params)
    tag_score = jax.block_until_ready(tag_score)
    assert tag_score.shape == (S, class_num)
    assert bool(jnp.all(jnp.isfinite(tag_score)))
    # rows of log_softmax must (approximately) sum to 1 in prob space
    assert bool(jnp.all(jnp.abs(jnp.sum(jnp.exp(tag_score), axis=1) - 1.0) < 1e-3))
    print("KERNEL_OK")
</pallas_src>

<mosaic_0001>
module attributes {stable_mosaic.version = 11 : i64} {
  func.func @han_kernel(%arg0: memref<4xi32, #tpu.memory_space<smem>>, %arg1: memref<4x8x32xf32, #tpu.memory_space<vmem>>, %arg2: memref<32x128xf32, #tpu.memory_space<vmem>>, %arg3: memref<32x128xf32, #tpu.memory_space<vmem>>, %arg4: memref<1x128xf32, #tpu.memory_space<vmem>>, %arg5: memref<32x32xf32, #tpu.memory_space<vmem>>, %arg6: memref<1x32xf32, #tpu.memory_space<vmem>>, %arg7: memref<32x32xf32, #tpu.memory_space<vmem>>, %arg8: memref<1x32xf32, #tpu.memory_space<vmem>>, %arg9: memref<1x32xf32, #tpu.memory_space<vmem>>, %arg10: memref<1x32xf32, #tpu.memory_space<vmem>>, %arg11: memref<1x1xf32, #tpu.memory_space<vmem>>, %arg12: memref<32x128xf32, #tpu.memory_space<vmem>>, %arg13: memref<32x128xf32, #tpu.memory_space<vmem>>, %arg14: memref<1x128xf32, #tpu.memory_space<vmem>>, %arg15: memref<32x8xf32, #tpu.memory_space<vmem>>, %arg16: memref<1x8xf32, #tpu.memory_space<vmem>>, %arg17: memref<8x32xf32, #tpu.memory_space<vmem>>, %arg18: memref<4x8xf32, #tpu.memory_space<vmem>>, %arg19: memref<8x4x32xf32, #tpu.memory_space<vmem>>) attributes {dimension_semantics = [], scalar_prefetch = 0 : i64, scratch_operands = 1 : i64, tpu.core_type = #tpu.core_type<tc>} {
    %c0 = arith.constant 0 : index
    %c0_0 = arith.constant 0 : index
    %c0_1 = arith.constant 0 : index
    %0 = vector.load %arg1[%c0, %c0_0, %c0_1] : memref<4x8x32xf32, #tpu.memory_space<vmem>>, vector<4x8x32xf32>
    %c0_2 = arith.constant 0 : index
    %c0_3 = arith.constant 0 : index
    %1 = vector.load %arg2[%c0_2, %c0_3] : memref<32x128xf32, #tpu.memory_space<vmem>>, vector<32x128xf32>
    %c0_4 = arith.constant 0 : index
    %c0_5 = arith.constant 0 : index
    %2 = vector.load %arg3[%c0_4, %c0_5] : memref<32x128xf32, #tpu.memory_space<vmem>>, vector<32x128xf32>
    %c0_6 = arith.constant 0 : index
    %c0_7 = arith.constant 0 : index
    %3 = vector.load %arg4[%c0_6, %c0_7] : memref<1x128xf32, #tpu.memory_space<vmem>>, vector<1x128xf32>
    %cst = arith.constant 0.000000e+00 : f32
    %4 = vector.broadcast %cst : f32 to vector<4x32xf32>
    %cst_8 = arith.constant 0.000000e+00 : f32
    %5 = vector.broadcast %cst_8 : f32 to vector<4x32xf32>
    %6 = vector.extract_strided_slice %0 {offsets = [0, 0, 0], sizes = [4, 1, 32], strides = [1, 1, 1]} : vector<4x8x32xf32> to vector<4x1x32xf32>
    %7 = vector.shape_cast %6 : vector<4x1x32xf32> to vector<4x32xf32>
    %cst_9 = arith.constant dense<0.000000e+00> : vector<4x128xf32>
    %8 = tpu.matmul %7, %1, %cst_9 {dimension_numbers = #tpu.dot_dimension_numbers<[1], [0], [0], [1], [0, 0, 1, 1], [], []>} : vector<4x32xf32>, vector<32x128xf32>, vector<4x128xf32> -> vector<4x128xf32>
    %cst_10 = arith.constant dense<0.000000e+00> : vector<4x128xf32>
    %9 = tpu.matmul %4, %2, %cst_10 {dimension_numbers = #tpu.dot_dimension_numbers<[1], [0], [0], [1], [0, 0, 1, 1], [], []>} : vector<4x32xf32>, vector<32x128xf32>, vector<4x128xf32> -> vector<4x128xf32>
    %10 = arith.addf %8, %9 : vector<4x128xf32>
    %11 = vector.broadcast %3 : vector<1x128xf32> to vector<4x128xf32>
    %12 = arith.addf %10, %11 : vector<4x128xf32>
    %cst_11 = arith.constant 5.000000e-01 : f32
    %13 = vector.broadcast %cst_11 : f32 to vector<4x128xf32>
    %14 = arith.mulf %13, %12 : vector<4x128xf32>
    %15 = math.tanh %14 : vector<4x128xf32>
    %cst_12 = arith.constant 1.000000e+00 : f32
    %16 = vector.broadcast %cst_12 : f32 to vector<4x128xf32>
    %17 = arith.addf %15, %16 : vector<4x128xf32>
    %cst_13 = arith.constant 5.000000e-01 : f32
    %18 = vector.broadcast %cst_13 : f32 to vector<4x128xf32>
    %19 = arith.mulf %18, %17 : vector<4x128xf32>
    %20 = math.tanh %12 : vector<4x128xf32>
    %21 = vector.extract_strided_slice %19 {offsets = [0, 32], sizes = [4, 32], strides = [1, 1]} : vector<4x128xf32> to vector<4x32xf32>
    %22 = arith.mulf %21, %5 : vector<4x32xf32>
    %23 = vector.extract_strided_slice %19 {offsets = [0, 0], sizes = [4, 32], strides = [1, 1]} : vector<4x128xf32> to vector<4x32xf32>
    %24 = vector.extract_strided_slice %20 {offsets = [0, 64], sizes = [4, 32], strides = [1, 1]} : vector<4x128xf32> to vector<4x32xf32>
    %25 = arith.mulf %23, %24 : vector<4x32xf32>
    %26 = arith.addf %22, %25 : vector<4x32xf32>
    %27 = vector.extract_strided_slice %19 {offsets = [0, 96], sizes = [4, 32], strides = [1, 1]} : vector<4x128xf32> to vector<4x32xf32>
    %28 = math.tanh %26 : vector<4x32xf32>
    %29 = arith.mulf %27, %28 : vector<4x32xf32>
    %c0_14 = arith.constant 0 : index
    %c0_15 = arith.constant 0 : index
    %c0_16 = arith.constant 0 : index
    %30 = vector.load %arg19[%c0_14, %c0_15, %c0_16] : memref<8x4x32xf32, #tpu.memory_space<vmem>>, vector<1x4x32xf32>
    %31 = vector.shape_cast %30 : vector<1x4x32xf32> to vector<4x32xf32>
    %32 = vector.shape_cast %29 : vector<4x32xf32> to vector<1x4x32xf32>
    tpu.vector_store %arg19[%c0_14, %c0_15, %c0_16], %32 {strides = array<i32>} : memref<8x4x32xf32, #tpu.memory_space<vmem>>, vector<1x4x32xf32>,
    %33 = vector.extract_strided_slice %0 {offsets = [0, 1, 0], sizes = [4, 1, 32], strides = [1, 1, 1]} : vector<4x8x32xf32> to vector<4x1x32xf32>
    %34 = vector.shape_cast %33 : vector<4x1x32xf32> to vector<4x32xf32>
    %cst_17 = arith.constant dense<0.000000e+00> : vector<4x128xf32>
    %35 = tpu.matmul %34, %1, %cst_17 {dimension_numbers = #tpu.dot_dimension_numbers<[1], [0], [0], [1], [0, 0, 1, 1], [], []>} : vector<4x32xf32>, vector<32x128xf32>, vector<4x128xf32> -> vector<4x128xf32>
    %cst_18 = arith.constant dense<0.000000e+00> : vector<4x128xf32>
    %36 = tpu.matmul %29, %2, %cst_18 {dimension_numbers = #tpu.dot_dimension_numbers<[1], [0], [0], [1], [0, 0, 1, 1], [], []>} : vector<4x32xf32>, vector<32x128xf32>, vector<4x128xf32> -> vector<4x128xf32>
    %37 = arith.addf %35, %36 : vector<4x128xf32>
    %38 = vector.broadcast %3 : vector<1x128xf32> to vector<4x128xf32>
    %39 = arith.addf %37, %38 : vector<4x128xf32>
    %cst_19 = arith.constant 5.000000e-01 : f32
    %40 = vector.broadcast %cst_19 : f32 to vector<4x128xf32>
    %41 = arith.mulf %40, %39 : vector<4x128xf32>
    %42 = math.tanh %41 : vector<4x128xf32>
    %cst_20 = arith.constant 1.000000e+00 : f32
    %43 = vector.broadcast %cst_20 : f32 to vector<4x128xf32>
    %44 = arith.addf %42, %43 : vector<4x128xf32>
    %cst_21 = arith.constant 5.000000e-01 : f32
    %45 = vector.broadcast %cst_21 : f32 to vector<4x128xf32>
    %46 = arith.mulf %45, %44 : vector<4x128xf32>
    %47 = math.tanh %39 : vector<4x128xf32>
    %48 = vector.extract_strided_slice %46 {offsets = [0, 32], sizes = [4, 32], strides = [1, 1]} : vector<4x128xf32> to vector<4x32xf32>
    %49 = arith.mulf %48, %26 : vector<4x32xf32>
    %50 = vector.extract_strided_slice %46 {offsets = [0, 0], sizes = [4, 32], strides = [1, 1]} : vector<4x128xf32> to vector<4x32xf32>
    %51 = vector.extract_strided_slice %47 {offsets = [0, 64], sizes = [4, 32], strides = [1, 1]} : vector<4x128xf32> to vector<4x32xf32>
    %52 = arith.mulf %50, %51 : vector<4x32xf32>
    %53 = arith.addf %49, %52 : vector<4x32xf32>
    %54 = vector.extract_strided_slice %46 {offsets = [0, 96], sizes = [4, 32], strides = [1, 1]} : vector<4x128xf32> to vector<4x32xf32>
    %55 = math.tanh %53 : vector<4x32xf32>
    %56 = arith.mulf %54, %55 : vector<4x32xf32>
    %c1 = arith.constant 1 : index
    %c0_22 = arith.constant 0 : index
    %c0_23 = arith.constant 0 : index
    %57 = vector.load %arg19[%c1, %c0_22, %c0_23] : memref<8x4x32xf32, #tpu.memory_space<vmem>>, vector<1x4x32xf32>
    %58 = vector.shape_cast %57 : vector<1x4x32xf32> to vector<4x32xf32>
    %59 = vector.shape_cast %56 : vector<4x32xf32> to vector<1x4x32xf32>
    tpu.vector_store %arg19[%c1, %c0_22, %c0_23], %59 {strides = array<i32>} : memref<8x4x32xf32, #tpu.memory_space<vmem>>, vector<1x4x32xf32>,
    %60 = vector.extract_strided_slice %0 {offsets = [0, 2, 0], sizes = [4, 1, 32], strides = [1, 1, 1]} : vector<4x8x32xf32> to vector<4x1x32xf32>
    %61 = vector.shape_cast %60 : vector<4x1x32xf32> to vector<4x32xf32>
    %cst_24 = arith.constant dense<0.000000e+00> : vector<4x128xf32>
    %62 = tpu.matmul %61, %1, %cst_24 {dimension_numbers = #tpu.dot_dimension_numbers<[1], [0], [0], [1], [0, 0, 1, 1], [], []>} : vector<4x32xf32>, vector<32x128xf32>, vector<4x128xf32> -> vector<4x128xf32>
    %cst_25 = arith.constant dense<0.000000e+00> : vector<4x128xf32>
    %63 = tpu.matmul %56, %2, %cst_25 {dimension_numbers = #tpu.dot_dimension_numbers<[1], [0], [0], [1], [0, 0, 1, 1], [], []>} : vector<4x32xf32>, vector<32x128xf32>, vector<4x128xf32> -> vector<4x128xf32>
    %64 = arith.addf %62, %63 : vector<4x128xf32>
    %65 = vector.broadcast %3 : vector<1x128xf32> to vector<4x128xf32>
    %66 = arith.addf %64, %65 : vector<4x128xf32>
    %cst_26 = arith.constant 5.000000e-01 : f32
    %67 = vector.broadcast %cst_26 : f32 to vector<4x128xf32>
    %68 = arith.mulf %67, %66 : vector<4x128xf32>
    %69 = math.tanh %68 : vector<4x128xf32>
    %cst_27 = arith.constant 1.000000e+00 : f32
    %70 = vector.broadcast %cst_27 : f32 to vector<4x128xf32>
    %71 = arith.addf %69, %70 : vector<4x128xf32>
    %cst_28 = arith.constant 5.000000e-01 : f32
    %72 = vector.broadcast %cst_28 : f32 to vector<4x128xf32>
    %73 = arith.mulf %72, %71 : vector<4x128xf32>
    %74 = math.tanh %66 : vector<4x128xf32>
    %75 = vector.extract_strided_slice %73 {offsets = [0, 32], sizes = [4, 32], strides = [1, 1]} : vector<4x128xf32> to vector<4x32xf32>
    %76 = arith.mulf %75, %53 : vector<4x32xf32>
    %77 = vector.extract_strided_slice %73 {offsets = [0, 0], sizes = [4, 32], strides = [1, 1]} : vector<4x128xf32> to vector<4x32xf32>
    %78 = vector.extract_strided_slice %74 {offsets = [0, 64], sizes = [4, 32], strides = [1, 1]} : vector<4x128xf32> to vector<4x32xf32>
    %79 = arith.mulf %77, %78 : vector<4x32xf32>
    %80 = arith.addf %76, %79 : vector<4x32xf32>
    %81 = vector.extract_strided_slice %73 {offsets = [0, 96], sizes = [4, 32], strides = [1, 1]} : vector<4x128xf32> to vector<4x32xf32>
    %82 = math.tanh %80 : vector<4x32xf32>
    %83 = arith.mulf %81, %82 : vector<4x32xf32>
    %c2 = arith.constant 2 : index
    %c0_29 = arith.constant 0 : index
    %c0_30 = arith.constant 0 : index
    %84 = vector.load %arg19[%c2, %c0_29, %c0_30] : memref<8x4x32xf32, #tpu.memory_space<vmem>>, vector<1x4x32xf32>
    %85 = vector.shape_cast %84 : vector<1x4x32xf32> to vector<4x32xf32>
    %86 = vector.shape_cast %83 : vector<4x32xf32> to vector<1x4x32xf32>
    tpu.vector_store %arg19[%c2, %c0_29, %c0_30], %86 {strides = array<i32>} : memref<8x4x32xf32, #tpu.memory_space<vmem>>, vector<1x4x32xf32>,
    %87 = vector.extract_strided_slice %0 {offsets = [0, 3, 0], sizes = [4, 1, 32], strides = [1, 1, 1]} : vector<4x8x32xf32> to vector<4x1x32xf32>
    %88 = vector.shape_cast %87 : vector<4x1x32xf32> to vector<4x32xf32>
    %cst_31 = arith.constant dense<0.000000e+00> : vector<4x128xf32>
    %89 = tpu.matmul %88, %1, %cst_31 {dimension_numbers = #tpu.dot_dimension_numbers<[1], [0], [0], [1], [0, 0, 1, 1], [], []>} : vector<4x32xf32>, vector<32x128xf32>, vector<4x128xf32> -> vector<4x128xf32>
    %cst_32 = arith.constant dense<0.000000e+00> : vector<4x128xf32>
    %90 = tpu.matmul %83, %2, %cst_32 {dimension_numbers = #tpu.dot_dimension_numbers<[1], [0], [0], [1], [0, 0, 1, 1], [], []>} : vector<4x32xf32>, vector<32x128xf32>, vector<4x128xf32> -> vector<4x128xf32>
    %91 = arith.addf %89, %90 : vector<4x128xf32>
    %92 = vector.broadcast %3 : vector<1x128xf32> to vector<4x128xf32>
    %93 = arith.addf %91, %92 : vector<4x128xf32>
    %cst_33 = arith.constant 5.000000e-01 : f32
    %94 = vector.broadcast %cst_33 : f32 to vector<4x128xf32>
    %95 = arith.mulf %94, %93 : vector<4x128xf32>
    %96 = math.tanh %95 : vector<4x128xf32>
    %cst_34 = arith.constant 1.000000e+00 : f32
    %97 = vector.broadcast %cst_34 : f32 to vector<4x128xf32>
    %98 = arith.addf %96, %97 : vector<4x128xf32>
    %cst_35 = arith.constant 5.000000e-01 : f32
    %99 = vector.broadcast %cst_35 : f32 to vector<4x128xf32>
    %100 = arith.mulf %99, %98 : vector<4x128xf32>
    %101 = math.tanh %93 : vector<4x128xf32>
    %102 = vector.extract_strided_slice %100 {offsets = [0, 32], sizes = [4, 32], strides = [1, 1]} : vector<4x128xf32> to vector<4x32xf32>
    %103 = arith.mulf %102, %80 : vector<4x32xf32>
    %104 = vector.extract_strided_slice %100 {offsets = [0, 0], sizes = [4, 32], strides = [1, 1]} : vector<4x128xf32> to vector<4x32xf32>
    %105 = vector.extract_strided_slice %101 {offsets = [0, 64], sizes = [4, 32], strides = [1, 1]} : vector<4x128xf32> to vector<4x32xf32>
    %106 = arith.mulf %104, %105 : vector<4x32xf32>
    %107 = arith.addf %103, %106 : vector<4x32xf32>
    %108 = vector.extract_strided_slice %100 {offsets = [0, 96], sizes = [4, 32], strides = [1, 1]} : vector<4x128xf32> to vector<4x32xf32>
    %109 = math.tanh %107 : vector<4x32xf32>
    %110 = arith.mulf %108, %109 : vector<4x32xf32>
    %c3 = arith.constant 3 : index
    %c0_36 = arith.constant 0 : index
    %c0_37 = arith.constant 0 : index
    %111 = vector.load %arg19[%c3, %c0_36, %c0_37] : memref<8x4x32xf32, #tpu.memory_space<vmem>>, vector<1x4x32xf32>
    %112 = vector.shape_cast %111 : vector<1x4x32xf32> to vector<4x32xf32>
    %113 = vector.shape_cast %110 : vector<4x32xf32> to vector<1x4x32xf32>
    tpu.vector_store %arg19[%c3, %c0_36, %c0_37], %113 {strides = array<i32>} : memref<8x4x32xf32, #tpu.memory_space<vmem>>, vector<1x4x32xf32>,
    %114 = vector.extract_strided_slice %0 {offsets = [0, 4, 0], sizes = [4, 1, 32], strides = [1, 1, 1]} : vector<4x8x32xf32> to vector<4x1x32xf32>
    %115 = vector.shape_cast %114 : vector<4x1x32xf32> to vector<4x32xf32>
    %cst_38 = arith.constant dense<0.000000e+00> : vector<4x128xf32>
    %116 = tpu.matmul %115, %1, %cst_38 {dimension_numbers = #tpu.dot_dimension_numbers<[1], [0], [0], [1], [0, 0, 1, 1], [], []>} : vector<4x32xf32>, vector<32x128xf32>, vector<4x128xf32> -> vector<4x128xf32>
    %cst_39 = arith.constant dense<0.000000e+00> : vector<4x128xf32>
    %117 = tpu.matmul %110, %2, %cst_39 {dimension_numbers = #tpu.dot_dimension_numbers<[1], [0], [0], [1], [0, 0, 1, 1], [], []>} : vector<4x32xf32>, vector<32x128xf32>, vector<4x128xf32> -> vector<4x128xf32>
    %118 = arith.addf %116, %117 : vector<4x128xf32>
    %119 = vector.broadcast %3 : vector<1x128xf32> to vector<4x128xf32>
    %120 = arith.addf %118, %119 : vector<4x128xf32>
    %cst_40 = arith.constant 5.000000e-01 : f32
    %121 = vector.broadcast %cst_40 : f32 to vector<4x128xf32>
    %122 = arith.mulf %121, %120 : vector<4x128xf32>
    %123 = math.tanh %122 : vector<4x128xf32>
    %cst_41 = arith.constant 1.000000e+00 : f32
    %124 = vector.broadcast %cst_41 : f32 to vector<4x128xf32>
    %125 = arith.addf %123, %124 : vector<4x128xf32>
    %cst_42 = arith.constant 5.000000e-01 : f32
    %126 = vector.broadcast %cst_42 : f32 to vector<4x128xf32>
    %127 = arith.mulf %126, %125 : vector<4x128xf32>
    %128 = math.tanh %120 : vector<4x128xf32>
    %129 = vector.extract_strided_slice %127 {offsets = [0, 32], sizes = [4, 32], strides = [1, 1]} : vector<4x128xf32> to vector<4x32xf32>
    %130 = arith.mulf %129, %107 : vector<4x32xf32>
    %131 = vector.extract_strided_slice %127 {offsets = [0, 0], sizes = [4, 32], strides = [1, 1]} : vector<4x128xf32> to vector<4x32xf32>
    %132 = vector.extract_strided_slice %128 {offsets = [0, 64], sizes = [4, 32], strides = [1, 1]} : vector<4x128xf32> to vector<4x32xf32>
    %133 = arith.mulf %131, %132 : vector<4x32xf32>
    %134 = arith.addf %130, %133 : vector<4x32xf32>
    %135 = vector.extract_strided_slice %127 {offsets = [0, 96], sizes = [4, 32], strides = [1, 1]} : vector<4x128xf32> to vector<4x32xf32>
    %136 = math.tanh %134 : vector<4x32xf32>
    %137 = arith.mulf %135, %136 : vector<4x32xf32>
    %c4 = arith.constant 4 : index
    %c0_43 = arith.constant 0 : index
    %c0_44 = arith.constant 0 : index
    %138 = vector.load %arg19[%c4, %c0_43, %c0_44] : memref<8x4x32xf32, #tpu.memory_space<vmem>>, vector<1x4x32xf32>
    %139 = vector.shape_cast %138 : vector<1x4x32xf32> to vector<4x32xf32>
    %140 = vector.shape_cast %137 : vector<4x32xf32> to vector<1x4x32xf32>
    tpu.vector_store %arg19[%c4, %c0_43, %c0_44], %140 {strides = array<i32>} : memref<8x4x32xf32, #tpu.memory_space<vmem>>, vector<1x4x32xf32>,
    %141 = vector.extract_strided_slice %0 {offsets = [0, 5, 0], sizes = [4, 1, 32], strides = [1, 1, 1]} : vector<4x8x32xf32> to vector<4x1x32xf32>
    %142 = vector.shape_cast %141 : vector<4x1x32xf32> to vector<4x32xf32>
    %cst_45 = arith.constant dense<0.000000e+00> : vector<4x128xf32>
    %143 = tpu.matmul %142, %1, %cst_45 {dimension_numbers = #tpu.dot_dimension_numbers<[1], [0], [0], [1], [0, 0, 1, 1], [], []>} : vector<4x32xf32>, vector<32x128xf32>, vector<4x128xf32> -> vector<4x128xf32>
    %cst_46 = arith.constant dense<0.000000e+00> : vector<4x128xf32>
    %144 = tpu.matmul %137, %2, %cst_46 {dimension_numbers = #tpu.dot_dimension_numbers<[1], [0], [0], [1], [0, 0, 1, 1], [], []>} : vector<4x32xf32>, vector<32x128xf32>, vector<4x128xf32> -> vector<4x128xf32>
    %145 = arith.addf %143, %144 : vector<4x128xf32>
    %146 = vector.broadcast %3 : vector<1x128xf32> to vector<4x128xf32>
    %147 = arith.addf %145, %146 : vector<4x128xf32>
    %cst_47 = arith.constant 5.000000e-01 : f32
    %148 = vector.broadcast %cst_47 : f32 to vector<4x128xf32>
    %149 = arith.mulf %148, %147 : vector<4x128xf32>
    %150 = math.tanh %149 : vector<4x128xf32>
    %cst_48 = arith.constant 1.000000e+00 : f32
    %151 = vector.broadcast %cst_48 : f32 to vector<4x128xf32>
    %152 = arith.addf %150, %151 : vector<4x128xf32>
    %cst_49 = arith.constant 5.000000e-01 : f32
    %153 = vector.broadcast %cst_49 : f32 to vector<4x128xf32>
    %154 = arith.mulf %153, %152 : vector<4x128xf32>
    %155 = math.tanh %147 : vector<4x128xf32>
    %156 = vector.extract_strided_slice %154 {offsets = [0, 32], sizes = [4, 32], strides = [1, 1]} : vector<4x128xf32> to vector<4x32xf32>
    %157 = arith.mulf %156, %134 : vector<4x32xf32>
    %158 = vector.extract_strided_slice %154 {offsets = [0, 0], sizes = [4, 32], strides = [1, 1]} : vector<4x128xf32> to vector<4x32xf32>
    %159 = vector.extract_strided_slice %155 {offsets = [0, 64], sizes = [4, 32], strides = [1, 1]} : vector<4x128xf32> to vector<4x32xf32>
    %160 = arith.mulf %158, %159 : vector<4x32xf32>
    %161 = arith.addf %157, %160 : vector<4x32xf32>
    %162 = vector.extract_strided_slice %154 {offsets = [0, 96], sizes = [4, 32], strides = [1, 1]} : vector<4x128xf32> to vector<4x32xf32>
    %163 = math.tanh %161 : vector<4x32xf32>
    %164 = arith.mulf %162, %163 : vector<4x32xf32>
    %c5 = arith.constant 5 : index
    %c0_50 = arith.constant 0 : index
    %c0_51 = arith.constant 0 : index
    %165 = vector.load %arg19[%c5, %c0_50, %c0_51] : memref<8x4x32xf32, #tpu.memory_space<vmem>>, vector<1x4x32xf32>
    %166 = vector.shape_cast %165 : vector<1x4x32xf32> to vector<4x32xf32>
    %167 = vector.shape_cast %164 : vector<4x32xf32> to vector<1x4x32xf32>
    tpu.vector_store %arg19[%c5, %c0_50, %c0_51], %167 {strides = array<i32>} : memref<8x4x32xf32, #tpu.memory_space<vmem>>, vector<1x4x32xf32>,
    %168 = vector.extract_strided_slice %0 {offsets = [0, 6, 0], sizes = [4, 1, 32], strides = [1, 1, 1]} : vector<4x8x32xf32> to vector<4x1x32xf32>
    %169 = vector.shape_cast %168 : vector<4x1x32xf32> to vector<4x32xf32>
    %cst_52 = arith.constant dense<0.000000e+00> : vector<4x128xf32>
    %170 = tpu.matmul %169, %1, %cst_52 {dimension_numbers = #tpu.dot_dimension_numbers<[1], [0], [0], [1], [0, 0, 1, 1], [], []>} : vector<4x32xf32>, vector<32x128xf32>, vector<4x128xf32> -> vector<4x128xf32>
    %cst_53 = arith.constant dense<0.000000e+00> : vector<4x128xf32>
    %171 = tpu.matmul %164, %2, %cst_53 {dimension_numbers = #tpu.dot_dimension_numbers<[1], [0], [0], [1], [0, 0, 1, 1], [], []>} : vector<4x32xf32>, vector<32x128xf32>, vector<4x128xf32> -> vector<4x128xf32>
    %172 = arith.addf %170, %171 : vector<4x128xf32>
    %173 = vector.broadcast %3 : vector<1x128xf32> to vector<4x128xf32>
    %174 = arith.addf %172, %173 : vector<4x128xf32>
    %cst_54 = arith.constant 5.000000e-01 : f32
    %175 = vector.broadcast %cst_54 : f32 to vector<4x128xf32>
    %176 = arith.mulf %175, %174 : vector<4x128xf32>
    %177 = math.tanh %176 : vector<4x128xf32>
    %cst_55 = arith.constant 1.000000e+00 : f32
    %178 = vector.broadcast %cst_55 : f32 to vector<4x128xf32>
    %179 = arith.addf %177, %178 : vector<4x128xf32>
    %cst_56 = arith.constant 5.000000e-01 : f32
    %180 = vector.broadcast %cst_56 : f32 to vector<4x128xf32>
    %181 = arith.mulf %180, %179 : vector<4x128xf32>
    %182 = math.tanh %174 : vector<4x128xf32>
    %183 = vector.extract_strided_slice %181 {offsets = [0, 32], sizes = [4, 32], strides = [1, 1]} : vector<4x128xf32> to vector<4x32xf32>
    %184 = arith.mulf %183, %161 : vector<4x32xf32>
    %185 = vector.extract_strided_slice %181 {offsets = [0, 0], sizes = [4, 32], strides = [1, 1]} : vector<4x128xf32> to vector<4x32xf32>
    %186 = vector.extract_strided_slice %182 {offsets = [0, 64], sizes = [4, 32], strides = [1, 1]} : vector<4x128xf32> to vector<4x32xf32>
    %187 = arith.mulf %185, %186 : vector<4x32xf32>
    %188 = arith.addf %184, %187 : vector<4x32xf32>
    %189 = vector.extract_strided_slice %181 {offsets = [0, 96], sizes = [4, 32], strides = [1, 1]} : vector<4x128xf32> to vector<4x32xf32>
    %190 = math.tanh %188 : vector<4x32xf32>
    %191 = arith.mulf %189, %190 : vector<4x32xf32>
    %c6 = arith.constant 6 : index
    %c0_57 = arith.constant 0 : index
    %c0_58 = arith.constant 0 : index
    %192 = vector.load %arg19[%c6, %c0_57, %c0_58] : memref<8x4x32xf32, #tpu.memory_space<vmem>>, vector<1x4x32xf32>
    %193 = vector.shape_cast %192 : vector<1x4x32xf32> to vector<4x32xf32>
    %194 = vector.shape_cast %191 : vector<4x32xf32> to vector<1x4x32xf32>
    tpu.vector_store %arg19[%c6, %c0_57, %c0_58], %194 {strides = array<i32>} : memref<8x4x32xf32, #tpu.memory_space<vmem>>, vector<1x4x32xf32>,
    %195 = vector.extract_strided_slice %0 {offsets = [0, 7, 0], sizes = [4, 1, 32], strides = [1, 1, 1]} : vector<4x8x32xf32> to vector<4x1x32xf32>
    %196 = vector.shape_cast %195 : vector<4x1x32xf32> to vector<4x32xf32>
    %cst_59 = arith.constant dense<0.000000e+00> : vector<4x128xf32>
    %197 = tpu.matmul %196, %1, %cst_59 {dimension_numbers = #tpu.dot_dimension_numbers<[1], [0], [0], [1], [0, 0, 1, 1], [], []>} : vector<4x32xf32>, vector<32x128xf32>, vector<4x128xf32> -> vector<4x128xf32>
    %cst_60 = arith.constant dense<0.000000e+00> : vector<4x128xf32>
    %198 = tpu.matmul %191, %2, %cst_60 {dimension_numbers = #tpu.dot_dimension_numbers<[1], [0], [0], [1], [0, 0, 1, 1], [], []>} : vector<4x32xf32>, vector<32x128xf32>, vector<4x128xf32> -> vector<4x128xf32>
    %199 = arith.addf %197, %198 : vector<4x128xf32>
    %200 = vector.broadcast %3 : vector<1x128xf32> to vector<4x128xf32>
    %201 = arith.addf %199, %200 : vector<4x128xf32>
    %cst_61 = arith.constant 5.000000e-01 : f32
    %202 = vector.broadcast %cst_61 : f32 to vector<4x128xf32>
    %203 = arith.mulf %202, %201 : vector<4x128xf32>
    %204 = math.tanh %203 : vector<4x128xf32>
    %cst_62 = arith.constant 1.000000e+00 : f32
    %205 = vector.broadcast %cst_62 : f32 to vector<4x128xf32>
    %206 = arith.addf %204, %205 : vector<4x128xf32>
    %cst_63 = arith.constant 5.000000e-01 : f32
    %207 = vector.broadcast %cst_63 : f32 to vector<4x128xf32>
    %208 = arith.mulf %207, %206 : vector<4x128xf32>
    %209 = math.tanh %201 : vector<4x128xf32>
    %210 = vector.extract_strided_slice %208 {offsets = [0, 32], sizes = [4, 32], strides = [1, 1]} : vector<4x128xf32> to vector<4x32xf32>
    %211 = arith.mulf %210, %188 : vector<4x32xf32>
    %212 = vector.extract_strided_slice %208 {offsets = [0, 0], sizes = [4, 32], strides = [1, 1]} : vector<4x128xf32> to vector<4x32xf32>
    %213 = vector.extract_strided_slice %209 {offsets = [0, 64], sizes = [4, 32], strides = [1, 1]} : vector<4x128xf32> to vector<4x32xf32>
    %214 = arith.mulf %212, %213 : vector<4x32xf32>
    %215 = arith.addf %211, %214 : vector<4x32xf32>
    %216 = vector.extract_strided_slice %208 {offsets = [0, 96], sizes = [4, 32], strides = [1, 1]} : vector<4x128xf32> to vector<4x32xf32>
    %217 = math.tanh %215 : vector<4x32xf32>
    %218 = arith.mulf %216, %217 : vector<4x32xf32>
    %c7 = arith.constant 7 : index
    %c0_64 = arith.constant 0 : index
    %c0_65 = arith.constant 0 : index
    %219 = vector.load %arg19[%c7, %c0_64, %c0_65] : memref<8x4x32xf32, #tpu.memory_space<vmem>>, vector<1x4x32xf32>
    %220 = vector.shape_cast %219 : vector<1x4x32xf32> to vector<4x32xf32>
    %221 = vector.shape_cast %218 : vector<4x32xf32> to vector<1x4x32xf32>
    tpu.vector_store %arg19[%c7, %c0_64, %c0_65], %221 {strides = array<i32>} : memref<8x4x32xf32, #tpu.memory_space<vmem>>, vector<1x4x32xf32>,
    %c0_66 = arith.constant 0 : index
    %c0_67 = arith.constant 0 : index
    %c0_68 = arith.constant 0 : index
    %222 = vector.load %arg19[%c0_66, %c0_67, %c0_68] : memref<8x4x32xf32, #tpu.memory_space<vmem>>, vector<8x4x32xf32>
    %c0_69 = arith.constant 0 : index
    %c0_70 = arith.constant 0 : index
    %223 = vector.load %arg6[%c0_69, %c0_70] : memref<1x32xf32, #tpu.memory_space<vmem>>, vector<1x32xf32>
    %c0_71 = arith.constant 0 : index
    %c0_72 = arith.constant 0 : index
    %224 = vector.load %arg8[%c0_71, %c0_72] : memref<1x32xf32, #tpu.memory_space<vmem>>, vector<1x32xf32>
    %225 = arith.addf %223, %224 : vector<1x32xf32>
    %c0_73 = arith.constant 0 : index
    %c0_74 = arith.constant 0 : index
    %226 = vector.load %arg9[%c0_73, %c0_74] : memref<1x32xf32, #tpu.memory_space<vmem>>, vector<1x32xf32>
    %227 = arith.addf %225, %226 : vector<1x32xf32>
    %228 = vector.shape_cast %0 : vector<4x8x32xf32> to vector<32x32xf32>
    %c0_75 = arith.constant 0 : index
    %c0_76 = arith.constant 0 : index
    %229 = vector.load %arg5[%c0_75, %c0_76] : memref<32x32xf32, #tpu.memory_space<vmem>>, vector<32x32xf32>
    %cst_77 = arith.constant dense<0.000000e+00> : vector<32x32xf32>
    %230 = tpu.matmul %228, %229, %cst_77 {dimension_numbers = #tpu.dot_dimension_numbers<[1], [0], [0], [1], [0, 0, 1, 1], [], []>} : vector<32x32xf32>, vector<32x32xf32>, vector<32x32xf32> -> vector<32x32xf32>
    %231 = vector.broadcast %227 : vector<1x32xf32> to vector<32x32xf32>
    %232 = arith.addf %230, %231 : vector<32x32xf32>
    %c0_78 = arith.constant 0 : index
    %c0_79 = arith.constant 0 : index
    %233 = vector.load %arg7[%c0_78, %c0_79] : memref<32x32xf32, #tpu.memory_space<vmem>>, vector<32x32xf32>
    %c0_80 = arith.constant 0 : index
    %c0_81 = arith.constant 0 : index
    %234 = vector.load %arg10[%c0_80, %c0_81] : memref<1x32xf32, #tpu.memory_space<vmem>>, vector<1x32xf32>
    %c0_82 = arith.constant 0 : index
    %c0_83 = arith.constant 0 : index
    %235 = vector.load %arg11[%c0_82, %c0_83] : memref<1x1xf32, #tpu.memory_space<vmem>>, vector<1x1xf32>
    %c0_84 = arith.constant 0 : index
    %c0_85 = arith.constant 0 : index
    %236 = vector.load %arg12[%c0_84, %c0_85] : memref<32x128xf32, #tpu.memory_space<vmem>>, vector<32x128xf32>
    %c0_86 = arith.constant 0 : index
    %c0_87 = arith.constant 0 : index
    %237 = vector.load %arg13[%c0_86, %c0_87] : memref<32x128xf32, #tpu.memory_space<vmem>>, vector<32x128xf32>
    %c0_88 = arith.constant 0 : index
    %c0_89 = arith.constant 0 : index
    %238 = vector.load %arg14[%c0_88, %c0_89] : memref<1x128xf32, #tpu.memory_space<vmem>>, vector<1x128xf32>
    %c0_90 = arith.constant 0 : index
    %c0_91 = arith.constant 0 : index
    %239 = vector.load %arg15[%c0_90, %c0_91] : memref<32x8xf32, #tpu.memory_space<vmem>>, vector<32x8xf32>
    %c0_92 = arith.constant 0 : index
    %c0_93 = arith.constant 0 : index
    %240 = vector.load %arg16[%c0_92, %c0_93] : memref<1x8xf32, #tpu.memory_space<vmem>>, vector<1x8xf32>
    %c0_94 = arith.constant 0 : index
    %c0_95 = arith.constant 0 : index
    %241 = vector.load %arg17[%c0_94, %c0_95] : memref<8x32xf32, #tpu.memory_space<vmem>>, vector<8x32xf32>
    %242 = tpu.iota {dimensions = array<i32: 0>} : vector<8x1xi32>
    %243 = tpu.iota {dimensions = array<i32: 1>} : vector<1x8xi32>
    %244 = tpu.iota {dimensions = array<i32: 0>} : vector<8x1xi32>
    %cst_96 = arith.constant 0.000000e+00 : f32
    %245 = vector.broadcast %cst_96 : f32 to vector<1x32xf32>
    %cst_97 = arith.constant 0.000000e+00 : f32
    %246 = vector.broadcast %cst_97 : f32 to vector<1x32xf32>
    %c0_98 = arith.constant 0 : index
    %247 = memref.load %arg0[%c0_98] : memref<4xi32, #tpu.memory_space<smem>>
    %248 = vector.broadcast %247 : i32 to vector<8x1xi32>
    %249 = arith.cmpi slt, %242, %248 : vector<8x1xi32>
    %250 = arith.extui %249 : vector<8x1xi1> to vector<8x1xi32>
    %251 = arith.sitofp %250 : vector<8x1xi32> to vector<8x1xf32>
    %252 = vector.extract_strided_slice %222 {offsets = [0, 0, 0], sizes = [8, 1, 32], strides = [1, 1, 1]} : vector<8x4x32xf32> to vector<8x1x32xf32>
    %253 = vector.shape_cast %252 : vector<8x1x32xf32> to vector<8x32xf32>
    %c1_i32 = arith.constant 1 : i32
    %254 = arith.maxsi %247, %c1_i32 : i32
    %255 = arith.sitofp %254 : i32 to f32
    %cst_99 = arith.constant 1.000000e+00 : f32
    %256 = arith.divf %cst_99, %255 : f32
    %257 = vector.broadcast %256 : f32 to vector<8x1xf32>
    %258 = arith.mulf %251, %257 : vector<8x1xf32>
    %259 = vector.broadcast %258 : vector<8x1xf32> to vector<8x32xf32>
    %260 = arith.mulf %259, %253 : vector<8x32xf32>
    %cst_100 = arith.constant dense<0.000000e+00> : vector<32xf32>
    %261 = vector.multi_reduction <add>, %260, %cst_100 [0] : vector<8x32xf32> to vector<32xf32>
    %262 = vector.shape_cast %261 : vector<32xf32> to vector<1x32xf32>
    %cst_101 = arith.constant dense<0.000000e+00> : vector<1x128xf32>
    %263 = tpu.matmul %262, %236, %cst_101 {dimension_numbers = #tpu.dot_dimension_numbers<[1], [0], [0], [1], [0, 0, 1, 1], [], []>} : vector<1x32xf32>, vector<32x128xf32>, vector<1x128xf32> -> vector<1x128xf32>
    %cst_102 = arith.constant dense<0.000000e+00> : vector<1x128xf32>
    %264 = tpu.matmul %245, %237, %cst_102 {dimension_numbers = #tpu.dot_dimension_numbers<[1], [0], [0], [1], [0, 0, 1, 1], [], []>} : vector<1x32xf32>, vector<32x128xf32>, vector<1x128xf32> -> vector<1x128xf32>
    %265 = arith.addf %263, %264 : vector<1x128xf32>
    %266 = arith.addf %265, %238 : vector<1x128xf32>
    %cst_103 = arith.constant 5.000000e-01 : f32
    %267 = vector.broadcast %cst_103 : f32 to vector<1x128xf32>
    %268 = arith.mulf %267, %266 : vector<1x128xf32>
    %269 = math.tanh %268 : vector<1x128xf32>
    %cst_104 = arith.constant 1.000000e+00 : f32
    %270 = vector.broadcast %cst_104 : f32 to vector<1x128xf32>
    %271 = arith.addf %269, %270 : vector<1x128xf32>
    %cst_105 = arith.constant 5.000000e-01 : f32
    %272 = vector.broadcast %cst_105 : f32 to vector<1x128xf32>
    %273 = arith.mulf %272, %271 : vector<1x128xf32>
    %274 = math.tanh %266 : vector<1x128xf32>
    %275 = vector.extract_strided_slice %273 {offsets = [0, 32], sizes = [1, 32], strides = [1, 1]} : vector<1x128xf32> to vector<1x32xf32>
    %276 = arith.mulf %275, %246 : vector<1x32xf32>
    %277 = vector.extract_strided_slice %273 {offsets = [0, 0], sizes = [1, 32], strides = [1, 1]} : vector<1x128xf32> to vector<1x32xf32>
    %278 = vector.extract_strided_slice %274 {offsets = [0, 64], sizes = [1, 32], strides = [1, 1]} : vector<1x128xf32> to vector<1x32xf32>
    %279 = arith.mulf %277, %278 : vector<1x32xf32>
    %280 = arith.addf %276, %279 : vector<1x32xf32>
    %281 = vector.extract_strided_slice %273 {offsets = [0, 96], sizes = [1, 32], strides = [1, 1]} : vector<1x128xf32> to vector<1x32xf32>
    %282 = math.tanh %280 : vector<1x32xf32>
    %283 = arith.mulf %281, %282 : vector<1x32xf32>
    %cst_106 = arith.constant dense<0.000000e+00> : vector<1x8xf32>
    %284 = tpu.matmul %283, %239, %cst_106 {dimension_numbers = #tpu.dot_dimension_numbers<[1], [0], [0], [1], [0, 0, 1, 1], [], []>} : vector<1x32xf32>, vector<32x8xf32>, vector<1x8xf32> -> vector<1x8xf32>
    %285 = arith.addf %284, %240 : vector<1x8xf32>
    %cst_107 = arith.constant dense<0xFF800000> : vector<1xf32>
    %286 = vector.multi_reduction <maximumf>, %285, %cst_107 [1] : vector<1x8xf32> to vector<1xf32>
    %287 = vector.shape_cast %286 : vector<1xf32> to vector<1x1xf32>
    %288 = vector.broadcast %287 : vector<1x1xf32> to vector<1x8xf32>
    %289 = arith.cmpf oge, %285, %288 : vector<1x8xf32>
    %c8_i32 = arith.constant 8 : i32
    %290 = vector.broadcast %c8_i32 : i32 to vector<1x8xi32>
    %291 = arith.select %289, %243, %290 : vector<1x8xi1>, vector<1x8xi32>
    %cst_108 = arith.constant dense<2147483647> : vector<1xi32>
    %292 = vector.multi_reduction <minsi>, %291, %cst_108 [1] : vector<1x8xi32> to vector<1xi32>
    %293 = vector.shape_cast %292 : vector<1xi32> to vector<1x1xi32>
    %294 = vector.broadcast %293 : vector<1x1xi32> to vector<8x1xi32>
    %295 = arith.cmpi eq, %244, %294 : vector<8x1xi32>
    %296 = arith.extui %295 : vector<8x1xi1> to vector<8x1xi32>
    %297 = arith.sitofp %296 : vector<8x1xi32> to vector<8x1xf32>
    %298 = vector.broadcast %297 : vector<8x1xf32> to vector<8x32xf32>
    %299 = arith.mulf %298, %241 : vector<8x32xf32>
    %cst_109 = arith.constant dense<0.000000e+00> : vector<32xf32>
    %300 = vector.multi_reduction <add>, %299, %cst_109 [0] : vector<8x32xf32> to vector<32xf32>
    %301 = vector.shape_cast %300 : vector<32xf32> to vector<1x32xf32>
    %c1_110 = arith.constant 1 : index
    %302 = memref.load %arg0[%c1_110] : memref<4xi32, #tpu.memory_space<smem>>
    %303 = vector.broadcast %302 : i32 to vector<8x1xi32>
    %304 = arith.cmpi slt, %242, %303 : vector<8x1xi32>
    %305 = arith.extui %304 : vector<8x1xi1> to vector<8x1xi32>
    %306 = arith.sitofp %305 : vector<8x1xi32> to vector<8x1xf32>
    %307 = vector.extract_strided_slice %222 {offsets = [0, 1, 0], sizes = [8, 1, 32], strides = [1, 1, 1]} : vector<8x4x32xf32> to vector<8x1x32xf32>
    %308 = vector.shape_cast %307 : vector<8x1x32xf32> to vector<8x32xf32>
    %309 = vector.extract_strided_slice %232 {offsets = [8, 0], sizes = [8, 32], strides = [1, 1]} : vector<32x32xf32> to vector<8x32xf32>
    %cst_111 = arith.constant dense<0.000000e+00> : vector<1x32xf32>
    %310 = tpu.matmul %283, %233, %cst_111 {dimension_numbers = #tpu.dot_dimension_numbers<[1], [0], [0], [1], [0, 0, 1, 1], [], []>} : vector<1x32xf32>, vector<32x32xf32>, vector<1x32xf32> -> vector<1x32xf32>
    %311 = arith.addf %310, %301 : vector<1x32xf32>
    %312 = vector.broadcast %311 : vector<1x32xf32> to vector<8x32xf32>
    %313 = arith.addf %309, %312 : vector<8x32xf32>
    %314 = vector.broadcast %234 : vector<1x32xf32> to vector<8x32xf32>
    %315 = arith.mulf %313, %314 : vector<8x32xf32>
    %cst_112 = arith.constant dense<0.000000e+00> : vector<8xf32>
    %316 = vector.multi_reduction <add>, %315, %cst_112 [1] : vector<8x32xf32> to vector<8xf32>
    %317 = vector.shape_cast %316 : vector<8xf32> to vector<8x1xf32>
    %318 = vector.broadcast %235 : vector<1x1xf32> to vector<8x1xf32>
    %319 = arith.addf %317, %318 : vector<8x1xf32>
    %320 = math.tanh %319 : vector<8x1xf32>
    %cst_113 = arith.constant 0.000000e+00 : f32
    %321 = vector.broadcast %cst_113 : f32 to vector<8x1xf32>
    %322 = arith.cmpf ogt, %306, %321 : vector<8x1xf32>
    %cst_114 = arith.constant -1.000000e+30 : f32
    %323 = vector.broadcast %cst_114 : f32 to vector<8x1xf32>
    %324 = arith.select %322, %320, %323 : vector<8x1xi1>, vector<8x1xf32>
    %cst_115 = arith.constant dense<0xFF800000> : vector<1xf32>
    %325 = vector.multi_reduction <maximumf>, %324, %cst_115 [0] : vector<8x1xf32> to vector<1xf32>
    %326 = vector.shape_cast %325 : vector<1xf32> to vector<1x1xf32>
    %327 = vector.broadcast %326 : vector<1x1xf32> to vector<8x1xf32>
    %328 = arith.subf %320, %327 : vector<8x1xf32>
    %329 = math.exp %328 : vector<8x1xf32>
    %330 = arith.mulf %329, %306 : vector<8x1xf32>
    %cst_116 = arith.constant dense<0.000000e+00> : vector<1xf32>
    %331 = vector.multi_reduction <add>, %330, %cst_116 [0] : vector<8x1xf32> to vector<1xf32>
    %332 = vector.shape_cast %331 : vector<1xf32> to vector<1x1xf32>
    %cst_117 = arith.constant 1.000000e-30 : f32
    %333 = vector.broadcast %cst_117 : f32 to vector<1x1xf32>
    %334 = arith.maximumf %332, %333 : vector<1x1xf32>
    %335 = tpu.reciprocal %334 {approx = true} : vector<1x1xf32> -> vector<1x1xf32>
    %336 = vector.broadcast %335 : vector<1x1xf32> to vector<8x1xf32>
    %337 = arith.mulf %330, %336 : vector<8x1xf32>
    %338 = vector.broadcast %337 : vector<8x1xf32> to vector<8x32xf32>
    %339 = arith.mulf %338, %308 : vector<8x32xf32>
    %cst_118 = arith.constant dense<0.000000e+00> : vector<32xf32>
    %340 = vector.multi_reduction <add>, %339, %cst_118 [0] : vector<8x32xf32> to vector<32xf32>
    %341 = vector.shape_cast %340 : vector<32xf32> to vector<1x32xf32>
    %cst_119 = arith.constant dense<0.000000e+00> : vector<1x128xf32>
    %342 = tpu.matmul %341, %236, %cst_119 {dimension_numbers = #tpu.dot_dimension_numbers<[1], [0], [0], [1], [0, 0, 1, 1], [], []>} : vector<1x32xf32>, vector<32x128xf32>, vector<1x128xf32> -> vector<1x128xf32>
    %cst_120 = arith.constant dense<0.000000e+00> : vector<1x128xf32>
    %343 = tpu.matmul %283, %237, %cst_120 {dimension_numbers = #tpu.dot_dimension_numbers<[1], [0], [0], [1], [0, 0, 1, 1], [], []>} : vector<1x32xf32>, vector<32x128xf32>, vector<1x128xf32> -> vector<1x128xf32>
    %344 = arith.addf %342, %343 : vector<1x128xf32>
    %345 = arith.addf %344, %238 : vector<1x128xf32>
    %cst_121 = arith.constant 5.000000e-01 : f32
    %346 = vector.broadcast %cst_121 : f32 to vector<1x128xf32>
    %347 = arith.mulf %346, %345 : vector<1x128xf32>
    %348 = math.tanh %347 : vector<1x128xf32>
    %cst_122 = arith.constant 1.000000e+00 : f32
    %349 = vector.broadcast %cst_122 : f32 to vector<1x128xf32>
    %350 = arith.addf %348, %349 : vector<1x128xf32>
    %cst_123 = arith.constant 5.000000e-01 : f32
    %351 = vector.broadcast %cst_123 : f32 to vector<1x128xf32>
    %352 = arith.mulf %351, %350 : vector<1x128xf32>
    %353 = math.tanh %345 : vector<1x128xf32>
    %354 = vector.extract_strided_slice %352 {offsets = [0, 32], sizes = [1, 32], strides = [1, 1]} : vector<1x128xf32> to vector<1x32xf32>
    %355 = arith.mulf %354, %280 : vector<1x32xf32>
    %356 = vector.extract_strided_slice %352 {offsets = [0, 0], sizes = [1, 32], strides = [1, 1]} : vector<1x128xf32> to vector<1x32xf32>
    %357 = vector.extract_strided_slice %353 {offsets = [0, 64], sizes = [1, 32], strides = [1, 1]} : vector<1x128xf32> to vector<1x32xf32>
    %358 = arith.mulf %356, %357 : vector<1x32xf32>
    %359 = arith.addf %355, %358 : vector<1x32xf32>
    %360 = vector.extract_strided_slice %352 {offsets = [0, 96], sizes = [1, 32], strides = [1, 1]} : vector<1x128xf32> to vector<1x32xf32>
    %361 = math.tanh %359 : vector<1x32xf32>
    %362 = arith.mulf %360, %361 : vector<1x32xf32>
    %cst_124 = arith.constant dense<0.000000e+00> : vector<1x8xf32>
    %363 = tpu.matmul %362, %239, %cst_124 {dimension_numbers = #tpu.dot_dimension_numbers<[1], [0], [0], [1], [0, 0, 1, 1], [], []>} : vector<1x32xf32>, vector<32x8xf32>, vector<1x8xf32> -> vector<1x8xf32>
    %364 = arith.addf %363, %240 : vector<1x8xf32>
    %cst_125 = arith.constant dense<0xFF800000> : vector<1xf32>
    %365 = vector.multi_reduction <maximumf>, %364, %cst_125 [1] : vector<1x8xf32> to vector<1xf32>
    %366 = vector.shape_cast %365 : vector<1xf32> to vector<1x1xf32>
    %367 = vector.broadcast %366 : vector<1x1xf32> to vector<1x8xf32>
    %368 = arith.cmpf oge, %364, %367 : vector<1x8xf32>
    %c8_i32_126 = arith.constant 8 : i32
    %369 = vector.broadcast %c8_i32_126 : i32 to vector<1x8xi32>
    %370 = arith.select %368, %243, %369 : vector<1x8xi1>, vector<1x8xi32>
    %cst_127 = arith.constant dense<2147483647> : vector<1xi32>
    %371 = vector.multi_reduction <minsi>, %370, %cst_127 [1] : vector<1x8xi32> to vector<1xi32>
    %372 = vector.shape_cast %371 : vector<1xi32> to vector<1x1xi32>
    %373 = vector.broadcast %372 : vector<1x1xi32> to vector<8x1xi32>
    %374 = arith.cmpi eq, %244, %373 : vector<8x1xi32>
    %375 = arith.extui %374 : vector<8x1xi1> to vector<8x1xi32>
    %376 = arith.sitofp %375 : vector<8x1xi32> to vector<8x1xf32>
    %377 = vector.broadcast %376 : vector<8x1xf32> to vector<8x32xf32>
    %378 = arith.mulf %377, %241 : vector<8x32xf32>
    %cst_128 = arith.constant dense<0.000000e+00> : vector<32xf32>
    %379 = vector.multi_reduction <add>, %378, %cst_128 [0] : vector<8x32xf32> to vector<32xf32>
    %380 = vector.shape_cast %379 : vector<32xf32> to vector<1x32xf32>
    %c2_129 = arith.constant 2 : index
    %381 = memref.load %arg0[%c2_129] : memref<4xi32, #tpu.memory_space<smem>>
    %382 = vector.broadcast %381 : i32 to vector<8x1xi32>
    %383 = arith.cmpi slt, %242, %382 : vector<8x1xi32>
    %384 = arith.extui %383 : vector<8x1xi1> to vector<8x1xi32>
    %385 = arith.sitofp %384 : vector<8x1xi32> to vector<8x1xf32>
    %386 = vector.extract_strided_slice %222 {offsets = [0, 2, 0], sizes = [8, 1, 32], strides = [1, 1, 1]} : vector<8x4x32xf32> to vector<8x1x32xf32>
    %387 = vector.shape_cast %386 : vector<8x1x32xf32> to vector<8x32xf32>
    %388 = vector.extract_strided_slice %232 {offsets = [16, 0], sizes = [8, 32], strides = [1, 1]} : vector<32x32xf32> to vector<8x32xf32>
    %cst_130 = arith.constant dense<0.000000e+00> : vector<1x32xf32>
    %389 = tpu.matmul %362, %233, %cst_130 {dimension_numbers = #tpu.dot_dimension_numbers<[1], [0], [0], [1], [0, 0, 1, 1], [], []>} : vector<1x32xf32>, vector<32x32xf32>, vector<1x32xf32> -> vector<1x32xf32>
    %390 = arith.addf %389, %380 : vector<1x32xf32>
    %391 = vector.broadcast %390 : vector<1x32xf32> to vector<8x32xf32>
    %392 = arith.addf %388, %391 : vector<8x32xf32>
    %393 = vector.broadcast %234 : vector<1x32xf32> to vector<8x32xf32>
    %394 = arith.mulf %392, %393 : vector<8x32xf32>
    %cst_131 = arith.constant dense<0.000000e+00> : vector<8xf32>
    %395 = vector.multi_reduction <add>, %394, %cst_131 [1] : vector<8x32xf32> to vector<8xf32>
    %396 = vector.shape_cast %395 : vector<8xf32> to vector<8x1xf32>
    %397 = vector.broadcast %235 : vector<1x1xf32> to vector<8x1xf32>
    %398 = arith.addf %396, %397 : vector<8x1xf32>
    %399 = math.tanh %398 : vector<8x1xf32>
    %cst_132 = arith.constant 0.000000e+00 : f32
    %400 = vector.broadcast %cst_132 : f32 to vector<8x1xf32>
    %401 = arith.cmpf ogt, %385, %400 : vector<8x1xf32>
    %cst_133 = arith.constant -1.000000e+30 : f32
    %402 = vector.broadcast %cst_133 : f32 to vector<8x1xf32>
    %403 = arith.select %401, %399, %402 : vector<8x1xi1>, vector<8x1xf32>
    %cst_134 = arith.constant dense<0xFF800000> : vector<1xf32>
    %404 = vector.multi_reduction <maximumf>, %403, %cst_134 [0] : vector<8x1xf32> to vector<1xf32>
    %405 = vector.shape_cast %404 : vector<1xf32> to vector<1x1xf32>
    %406 = vector.broadcast %405 : vector<1x1xf32> to vector<8x1xf32>
    %407 = arith.subf %399, %406 : vector<8x1xf32>
    %408 = math.exp %407 : vector<8x1xf32>
    %409 = arith.mulf %408, %385 : vector<8x1xf32>
    %cst_135 = arith.constant dense<0.000000e+00> : vector<1xf32>
    %410 = vector.multi_reduction <add>, %409, %cst_135 [0] : vector<8x1xf32> to vector<1xf32>
    %411 = vector.shape_cast %410 : vector<1xf32> to vector<1x1xf32>
    %cst_136 = arith.constant 1.000000e-30 : f32
    %412 = vector.broadcast %cst_136 : f32 to vector<1x1xf32>
    %413 = arith.maximumf %411, %412 : vector<1x1xf32>
    %414 = tpu.reciprocal %413 {approx = true} : vector<1x1xf32> -> vector<1x1xf32>
    %415 = vector.broadcast %414 : vector<1x1xf32> to vector<8x1xf32>
    %416 = arith.mulf %409, %415 : vector<8x1xf32>
    %417 = vector.broadcast %416 : vector<8x1xf32> to vector<8x32xf32>
    %418 = arith.mulf %417, %387 : vector<8x32xf32>
    %cst_137 = arith.constant dense<0.000000e+00> : vector<32xf32>
    %419 = vector.multi_reduction <add>, %418, %cst_137 [0] : vector<8x32xf32> to vector<32xf32>
    %420 = vector.shape_cast %419 : vector<32xf32> to vector<1x32xf32>
    %cst_138 = arith.constant dense<0.000000e+00> : vector<1x128xf32>
    %421 = tpu.matmul %420, %236, %cst_138 {dimension_numbers = #tpu.dot_dimension_numbers<[1], [0], [0], [1], [0, 0, 1, 1], [], []>} : vector<1x32xf32>, vector<32x128xf32>, vector<1x128xf32> -> vector<1x128xf32>
    %cst_139 = arith.constant dense<0.000000e+00> : vector<1x128xf32>
    %422 = tpu.matmul %362, %237, %cst_139 {dimension_numbers = #tpu.dot_dimension_numbers<[1], [0], [0], [1], [0, 0, 1, 1], [], []>} : vector<1x32xf32>, vector<32x128xf32>, vector<1x128xf32> -> vector<1x128xf32>
    %423 = arith.addf %421, %422 : vector<1x128xf32>
    %424 = arith.addf %423, %238 : vector<1x128xf32>
    %cst_140 = arith.constant 5.000000e-01 : f32
    %425 = vector.broadcast %cst_140 : f32 to vector<1x128xf32>
    %426 = arith.mulf %425, %424 : vector<1x128xf32>
    %427 = math.tanh %426 : vector<1x128xf32>
    %cst_141 = arith.constant 1.000000e+00 : f32
    %428 = vector.broadcast %cst_141 : f32 to vector<1x128xf32>
    %429 = arith.addf %427, %428 : vector<1x128xf32>
    %cst_142 = arith.constant 5.000000e-01 : f32
    %430 = vector.broadcast %cst_142 : f32 to vector<1x128xf32>
    %431 = arith.mulf %430, %429 : vector<1x128xf32>
    %432 = math.tanh %424 : vector<1x128xf32>
    %433 = vector.extract_strided_slice %431 {offsets = [0, 32], sizes = [1, 32], strides = [1, 1]} : vector<1x128xf32> to vector<1x32xf32>
    %434 = arith.mulf %433, %359 : vector<1x32xf32>
    %435 = vector.extract_strided_slice %431 {offsets = [0, 0], sizes = [1, 32], strides = [1, 1]} : vector<1x128xf32> to vector<1x32xf32>
    %436 = vector.extract_strided_slice %432 {offsets = [0, 64], sizes = [1, 32], strides = [1, 1]} : vector<1x128xf32> to vector<1x32xf32>
    %437 = arith.mulf %435, %436 : vector<1x32xf32>
    %438 = arith.addf %434, %437 : vector<1x32xf32>
    %439 = vector.extract_strided_slice %431 {offsets = [0, 96], sizes = [1, 32], strides = [1, 1]} : vector<1x128xf32> to vector<1x32xf32>
    %440 = math.tanh %438 : vector<1x32xf32>
    %441 = arith.mulf %439, %440 : vector<1x32xf32>
    %cst_143 = arith.constant dense<0.000000e+00> : vector<1x8xf32>
    %442 = tpu.matmul %441, %239, %cst_143 {dimension_numbers = #tpu.dot_dimension_numbers<[1], [0], [0], [1], [0, 0, 1, 1], [], []>} : vector<1x32xf32>, vector<32x8xf32>, vector<1x8xf32> -> vector<1x8xf32>
    %443 = arith.addf %442, %240 : vector<1x8xf32>
    %cst_144 = arith.constant dense<0xFF800000> : vector<1xf32>
    %444 = vector.multi_reduction <maximumf>, %443, %cst_144 [1] : vector<1x8xf32> to vector<1xf32>
    %445 = vector.shape_cast %444 : vector<1xf32> to vector<1x1xf32>
    %446 = vector.broadcast %445 : vector<1x1xf32> to vector<1x8xf32>
    %447 = arith.cmpf oge, %443, %446 : vector<1x8xf32>
    %c8_i32_145 = arith.constant 8 : i32
    %448 = vector.broadcast %c8_i32_145 : i32 to vector<1x8xi32>
    %449 = arith.select %447, %243, %448 : vector<1x8xi1>, vector<1x8xi32>
    %cst_146 = arith.constant dense<2147483647> : vector<1xi32>
    %450 = vector.multi_reduction <minsi>, %449, %cst_146 [1] : vector<1x8xi32> to vector<1xi32>
    %451 = vector.shape_cast %450 : vector<1xi32> to vector<1x1xi32>
    %452 = vector.broadcast %451 : vector<1x1xi32> to vector<8x1xi32>
    %453 = arith.cmpi eq, %244, %452 : vector<8x1xi32>
    %454 = arith.extui %453 : vector<8x1xi1> to vector<8x1xi32>
    %455 = arith.sitofp %454 : vector<8x1xi32> to vector<8x1xf32>
    %456 = vector.broadcast %455 : vector<8x1xf32> to vector<8x32xf32>
    %457 = arith.mulf %456, %241 : vector<8x32xf32>
    %cst_147 = arith.constant dense<0.000000e+00> : vector<32xf32>
    %458 = vector.multi_reduction <add>, %457, %cst_147 [0] : vector<8x32xf32> to vector<32xf32>
    %459 = vector.shape_cast %458 : vector<32xf32> to vector<1x32xf32>
    %c3_148 = arith.constant 3 : index
    %460 = memref.load %arg0[%c3_148] : memref<4xi32, #tpu.memory_space<smem>>
    %461 = vector.broadcast %460 : i32 to vector<8x1xi32>
    %462 = arith.cmpi slt, %242, %461 : vector<8x1xi32>
    %463 = arith.extui %462 : vector<8x1xi1> to vector<8x1xi32>
    %464 = arith.sitofp %463 : vector<8x1xi32> to vector<8x1xf32>
    %465 = vector.extract_strided_slice %222 {offsets = [0, 3, 0], sizes = [8, 1, 32], strides = [1, 1, 1]} : vector<8x4x32xf32> to vector<8x1x32xf32>
    %466 = vector.shape_cast %465 : vector<8x1x32xf32> to vector<8x32xf32>
    %467 = vector.extract_strided_slice %232 {offsets = [24, 0], sizes = [8, 32], strides = [1, 1]} : vector<32x32xf32> to vector<8x32xf32>
    %cst_149 = arith.constant dense<0.000000e+00> : vector<1x32xf32>
    %468 = tpu.matmul %441, %233, %cst_149 {dimension_numbers = #tpu.dot_dimension_numbers<[1], [0], [0], [1], [0, 0, 1, 1], [], []>} : vector<1x32xf32>, vector<32x32xf32>, vector<1x32xf32> -> vector<1x32xf32>
    %469 = arith.addf %468, %459 : vector<1x32xf32>
    %470 = vector.broadcast %469 : vector<1x32xf32> to vector<8x32xf32>
    %471 = arith.addf %467, %470 : vector<8x32xf32>
    %472 = vector.broadcast %234 : vector<1x32xf32> to vector<8x32xf32>
    %473 = arith.mulf %471, %472 : vector<8x32xf32>
    %cst_150 = arith.constant dense<0.000000e+00> : vector<8xf32>
    %474 = vector.multi_reduction <add>, %473, %cst_150 [1] : vector<8x32xf32> to vector<8xf32>
    %475 = vector.shape_cast %474 : vector<8xf32> to vector<8x1xf32>
    %476 = vector.broadcast %235 : vector<1x1xf32> to vector<8x1xf32>
    %477 = arith.addf %475, %476 : vector<8x1xf32>
    %478 = math.tanh %477 : vector<8x1xf32>
    %cst_151 = arith.constant 0.000000e+00 : f32
    %479 = vector.broadcast %cst_151 : f32 to vector<8x1xf32>
    %480 = arith.cmpf ogt, %464, %479 : vector<8x1xf32>
    %cst_152 = arith.constant -1.000000e+30 : f32
    %481 = vector.broadcast %cst_152 : f32 to vector<8x1xf32>
    %482 = arith.select %480, %478, %481 : vector<8x1xi1>, vector<8x1xf32>
    %cst_153 = arith.constant dense<0xFF800000> : vector<1xf32>
    %483 = vector.multi_reduction <maximumf>, %482, %cst_153 [0] : vector<8x1xf32> to vector<1xf32>
    %484 = vector.shape_cast %483 : vector<1xf32> to vector<1x1xf32>
    %485 = vector.broadcast %484 : vector<1x1xf32> to vector<8x1xf32>
    %486 = arith.subf %478, %485 : vector<8x1xf32>
    %487 = math.exp %486 : vector<8x1xf32>
    %488 = arith.mulf %487, %464 : vector<8x1xf32>
    %cst_154 = arith.constant dense<0.000000e+00> : vector<1xf32>
    %489 = vector.multi_reduction <add>, %488, %cst_154 [0] : vector<8x1xf32> to vector<1xf32>
    %490 = vector.shape_cast %489 : vector<1xf32> to vector<1x1xf32>
    %cst_155 = arith.constant 1.000000e-30 : f32
    %491 = vector.broadcast %cst_155 : f32 to vector<1x1xf32>
    %492 = arith.maximumf %490, %491 : vector<1x1xf32>
    %493 = tpu.reciprocal %492 {approx = true} : vector<1x1xf32> -> vector<1x1xf32>
    %494 = vector.broadcast %493 : vector<1x1xf32> to vector<8x1xf32>
    %495 = arith.mulf %488, %494 : vector<8x1xf32>
    %496 = vector.broadcast %495 : vector<8x1xf32> to vector<8x32xf32>
    %497 = arith.mulf %496, %466 : vector<8x32xf32>
    %cst_156 = arith.constant dense<0.000000e+00> : vector<32xf32>
    %498 = vector.multi_reduction <add>, %497, %cst_156 [0] : vector<8x32xf32> to vector<32xf32>
    %499 = vector.shape_cast %498 : vector<32xf32> to vector<1x32xf32>
    %cst_157 = arith.constant dense<0.000000e+00> : vector<1x128xf32>
    %500 = tpu.matmul %499, %236, %cst_157 {dimension_numbers = #tpu.dot_dimension_numbers<[1], [0], [0], [1], [0, 0, 1, 1], [], []>} : vector<1x32xf32>, vector<32x128xf32>, vector<1x128xf32> -> vector<1x128xf32>
    %cst_158 = arith.constant dense<0.000000e+00> : vector<1x128xf32>
    %501 = tpu.matmul %441, %237, %cst_158 {dimension_numbers = #tpu.dot_dimension_numbers<[1], [0], [0], [1], [0, 0, 1, 1], [], []>} : vector<1x32xf32>, vector<32x128xf32>, vector<1x128xf32> -> vector<1x128xf32>
    %502 = arith.addf %500, %501 : vector<1x128xf32>
    %503 = arith.addf %502, %238 : vector<1x128xf32>
    %cst_159 = arith.constant 5.000000e-01 : f32
    %504 = vector.broadcast %cst_159 : f32 to vector<1x128xf32>
    %505 = arith.mulf %504, %503 : vector<1x128xf32>
    %506 = math.tanh %505 : vector<1x128xf32>
    %cst_160 = arith.constant 1.000000e+00 : f32
    %507 = vector.broadcast %cst_160 : f32 to vector<1x128xf32>
    %508 = arith.addf %506, %507 : vector<1x128xf32>
    %cst_161 = arith.constant 5.000000e-01 : f32
    %509 = vector.broadcast %cst_161 : f32 to vector<1x128xf32>
    %510 = arith.mulf %509, %508 : vector<1x128xf32>
    %511 = math.tanh %503 : vector<1x128xf32>
    %512 = vector.extract_strided_slice %510 {offsets = [0, 32], sizes = [1, 32], strides = [1, 1]} : vector<1x128xf32> to vector<1x32xf32>
    %513 = arith.mulf %512, %438 : vector<1x32xf32>
    %514 = vector.extract_strided_slice %510 {offsets = [0, 0], sizes = [1, 32], strides = [1, 1]} : vector<1x128xf32> to vector<1x32xf32>
    %515 = vector.extract_strided_slice %511 {offsets = [0, 64], sizes = [1, 32], strides = [1, 1]} : vector<1x128xf32> to vector<1x32xf32>
    %516 = arith.mulf %514, %515 : vector<1x32xf32>
    %517 = arith.addf %513, %516 : vector<1x32xf32>
    %518 = vector.extract_strided_slice %510 {offsets = [0, 96], sizes = [1, 32], strides = [1, 1]} : vector<1x128xf32> to vector<1x32xf32>
    %519 = math.tanh %517 : vector<1x32xf32>
    %520 = arith.mulf %518, %519 : vector<1x32xf32>
    %cst_162 = arith.constant dense<0.000000e+00> : vector<1x8xf32>
    %521 = tpu.matmul %520, %239, %cst_162 {dimension_numbers = #tpu.dot_dimension_numbers<[1], [0], [0], [1], [0, 0, 1, 1], [], []>} : vector<1x32xf32>, vector<32x8xf32>, vector<1x8xf32> -> vector<1x8xf32>
    %522 = arith.addf %521, %240 : vector<1x8xf32>
    %523 = tpu.concatenate %285, %364, %443, %522 in 0 : vector<1x8xf32>, vector<1x8xf32>, vector<1x8xf32>, vector<1x8xf32> -> vector<4x8xf32>
    %cst_163 = arith.constant dense<0xFF800000> : vector<4xf32>
    %524 = vector.multi_reduction <maximumf>, %523, %cst_163 [1] : vector<4x8xf32> to vector<4xf32>
    %525 = vector.shape_cast %524 : vector<4xf32> to vector<4x1xf32>
    %526 = vector.broadcast %525 : vector<4x1xf32> to vector<4x8xf32>
    %527 = arith.subf %523, %526 : vector<4x8xf32>
    %528 = math.exp %527 : vector<4x8xf32>
    %cst_164 = arith.constant dense<0.000000e+00> : vector<4xf32>
    %529 = vector.multi_reduction <add>, %528, %cst_164 [1] : vector<4x8xf32> to vector<4xf32>
    %530 = vector.shape_cast %529 : vector<4xf32> to vector<4x1xf32>
    %531 = math.log %530 : vector<4x1xf32>
    %532 = arith.addf %531, %525 : vector<4x1xf32>
    %533 = vector.broadcast %532 : vector<4x1xf32> to vector<4x8xf32>
    %534 = arith.subf %523, %533 : vector<4x8xf32>
    %c0_165 = arith.constant 0 : index
    %c0_166 = arith.constant 0 : index
    %535 = vector.load %arg18[%c0_165, %c0_166] : memref<4x8xf32, #tpu.memory_space<vmem>>, vector<4x8xf32>
    tpu.vector_store %arg18[%c0_165, %c0_166], %534 {strides = array<i32>} : memref<4x8xf32, #tpu.memory_space<vmem>>, vector<4x8xf32>,
    return
  }
}

</mosaic_0001>

<bundles_post_ra>
// kernel: han_forward.1
= control target key start
LH: loop header
LB: loop body
LE: loop exit
PB: predicated region body
PF: predicated region fallthrough
CT: control target
= control target key end

     0   :  { %s2616_s0 = inlined_call_operand.vmem [shape: s32[4], index: 0, kind: input, shape index: {}]   ;;  %s2617_s1 = inlined_call_operand.vmem [shape: f32[4,8,32], index: 1, kind: input, shape index: {}]   ;;  %s2618_s2 = inlined_call_operand.vmem [shape: f32[32,128], index: 2, kind: input, shape index: {}]   ;;  %s2619_s3 = inlined_call_operand.vmem [shape: f32[32,128], index: 3, kind: input, shape index: {}]   ;;  %s2620_s4 = inlined_call_operand.vmem [shape: f32[1,128], index: 4, kind: input, shape index: {}]   ;;  %s2621_s5 = inlined_call_operand.vmem [shape: f32[32,32], index: 5, kind: input, shape index: {}]   ;;  %s2622_s6 = inlined_call_operand.vmem [shape: f32[1,32], index: 6, kind: input, shape index: {}]   ;;  %s2623_s7 = inlined_call_operand.vmem [shape: f32[32,32], index: 7, kind: input, shape index: {}]   ;;  %s2624_s8 = inlined_call_operand.vmem [shape: f32[1,32], index: 8, kind: input, shape index: {}]   ;;  %s2625_s9 = inlined_call_operand.vmem [shape: f32[1,32], index: 9, kind: input, shape index: {}]   ;;  %s2626_s10 = inlined_call_operand.vmem [shape: f32[1,32], index: 10, kind: input, shape index: {}]   ;;  %s2627_s11 = inlined_call_operand.<no memory space> [shape: f32[1,1], index: 11, kind: input, shape index: {}]   ;;  %s2628_s12 = inlined_call_operand.vmem [shape: f32[32,128], index: 12, kind: input, shape index: {}]   ;;  %s2629_s13 = inlined_call_operand.vmem [shape: f32[32,128], index: 13, kind: input, shape index: {}]   ;;  %s2630_s14 = inlined_call_operand.vmem [shape: f32[1,128], index: 14, kind: input, shape index: {}]   ;;  %s2631_s15 = inlined_call_operand.vmem [shape: f32[32,8], index: 15, kind: input, shape index: {}]   ;;  %s2632_s16 = inlined_call_operand.vmem [shape: f32[1,8], index: 16, kind: input, shape index: {}]   ;;  %s2633_s17 = inlined_call_operand.vmem [shape: f32[8,32], index: 17, kind: input, shape index: {}]   ;;  %s2634_s18 = inlined_call_operand.hbm [shape: f32[4,8], index: 18, kind: output, shape index: {}]  }
   0x1   :  { %2637 = sst [smem:[#allocation10_spill]] %s2616_s0  ;;  %v23_v0 = vstv %s2627_s11 }
   0x2   :  { %2638 = sst [smem:[#allocation11_spill]] %s2617_s1  ;;  %24 = vst [vmem:[#allocation3] sm:$0x1] %v23_v0 }
   0x3   :  { %2639 = sst [smem:[#allocation12_spill]] %s2618_s2 }
   0x4   :  { %25 = vsyncpa [#allocation6], 0 }
   0x5   :  { %26 = vsyncpa [#allocation5], 0  ;;  %s2640_s0 = sld [smem:[#allocation10_spill]]  ;;  %s1841_s1 = smov [#allocation4]  }
   0xb   :  { %s32_s19 = sshll.u32 %s2640_s0, 4  ;;  %s33_s19 = int_to_ptr.vmem [resolvable:$true] %s32_s19 }
   0xc   :  { %35 = dma.vmem_to_smem %s33_s19, 16, %s1841_s1, [#allocation6]  }
   0xd   :  { %1837 = dma.done.wait [#allocation6], 16  }
   0xe   :  { %1838 = vsyncadd [#allocation6], 4294967280 }
   0xf   :  { %74 = sfence }
  0x10   :  { %v1951_v1 = vld [vmem:[%s2619_s3 + $0x18] sm:$0xff]  ;;  %s2641_s2 = sld [smem:[#allocation12_spill]]  ;;  %v1961_v3 = vld [vmem:[%s2619_s3 + $0x10] sm:$0xff]  ;;  %v1973_v5 = vld [vmem:[%s2619_s3 + $0x8] sm:$0xff]  ;;  %vm117_vm0 = vcmask 1041409   ;;  %vm120_vm1 = vcmask 1042434  }
  0x11   :  { %104 = vmatpush.msra.mxu0 %v1951_v1  ;;  %v1983_v7 = vld [vmem:[%s2619_s3] sm:$0xff]  ;;  %s2642_s21 = sld [smem:[#allocation11_spill]]  ;;  %193 = vmatpush.msra.mxu2 %v1951_v1  ;;  %vm123_vm2 = vcmask 1043459   ;;  %vm88_vm3 = vcmask 261120   ;;  %v1842_v18 = vmov 0.0   ;;  %s1843_s29 = smov 64  }
  0x12   :  { %v2060_v21 = vld [vmem:[%s2620_s4] ss:$0 sm:$0xff]  ;;  %s1844_s30 = smov 32   ;;  %vm177_vm4 = vcmask 257024   ;;  %vm858_vm5 = vcmask 1044484   ;;  %vm861_vm6 = vcmask 1045509  }
  0x13   :  { %105 = vmatpush.msra.mxu0 %v1961_v3  ;;  %194 = vmatpush.msra.mxu2 %v1961_v3  ;;  %vm864_vm7 = vcmask 1046534   ;;  %s2254_s4 = sld [smem:[#allocation4]]  ;;  %vm867_vm13 = vcmask 1047559   ;;  %vm969_vm14 = vcmask 57344  }
  0x15   :  { %106 = vmatpush.msra.mxu0 %v1973_v5  ;;  %195 = vmatpush.msra.mxu2 %v1973_v5 }
  0x16   :  { %v1956_v2 = vld [vmem:[%s2641_s2 + $0x18] sm:$0xff]  ;;  %v1968_v4 = vld [vmem:[%s2641_s2 + $0x10] sm:$0xff]  ;;  %v1978_v6 = vld [vmem:[%s2641_s2 + $0x8] sm:$0xff] }
  0x17   :  { %139 = vmatpush.msra.mxu1 %v1956_v2  ;;  %v1988_v8 = vld [vmem:[%s2642_s21] sm:$0xff]  ;;  %221 = vmatpush.msra.mxu3 %v1956_v2  ;;  %v1997_v9 = vld [vmem:[%s2642_s21 + $0x8] sm:$0xff]  ;;  %v2002_v10 = vld [vmem:[%s2642_s21 + $0x10] sm:$0xff] }
  0x18   :  { %v2007_v11 = vld [vmem:[%s2642_s21 + $0x18] sm:$0xff]  ;;  %v2012_v12 = vld [vmem:[%s2641_s2] sm:$0xff]  ;;  %v116_v13 = vrot.slane %v1997_v9, 7  ;;  %v119_v14 = vrot.slane %v2002_v10, 6  ;;  %107 = vmatpush.msra.mxu0 %v1983_v7  ;;  %196 = vmatpush.msra.mxu2 %v1983_v7  ;;  %v201_v38 = vrot.slane %v1988_v8, 1  ;;  %v203_v39 = vrot.slane %v2002_v10, 7 }
  0x19   :  { %140 = vmatpush.msra.mxu1 %v1968_v4  ;;  %v122_v15 = vrot.slane %v2007_v11, 5  ;;  %222 = vmatpush.msra.mxu3 %v1968_v4  ;;  %v205_v41 = vrot.slane %v2007_v11, 6  ;;  %v280_v62 = vrot.slane %v1988_v8, 2  ;;  %v281_v63 = vrot.slane %v1997_v9, 1  ;;  %p822_p0 = scmp.gt.s32.totalorder %s2254_s4, 1 }
  0x1a   :  { %v118_v16 = vsel %vm117_vm0, %v116_v13, %v1988_v8  ;;  %108 = vmatmul.f32.vlgmr.msra.gmra.mxu0 %v1842_v18  ;;  %351 = vmatpush.msrb.mxu2 %v1951_v1  ;;  %v202_v40 = vsel %vm117_vm0, %v1997_v9, %v201_v38  ;;  %v284_v13 = vrot.slane %v2007_v11, 7  ;;  %v362_v38 = vrot.slane %v2002_v10, 1 }
  0x1b   :  { %141 = vmatpush.msra.mxu1 %v1978_v6  ;;  %223 = vmatpush.msra.mxu3 %v1978_v6  ;;  %v121_v17 = vsel %vm120_vm1, %v119_v14, %v118_v16  ;;  %v204_v42 = vsel %vm120_vm1, %v203_v39, %v202_v40  ;;  %v282_v0 = vsel %vm117_vm0, %v281_v63, %v280_v62  ;;  %s823_s0 = scalar_select %p822_p0, %s2254_s4, 1 }
  0x1c   :  { %v124_v19 = vsel %vm123_vm2, %v122_v15, %v121_v17  ;;  %272 = vmatpush.msrb.mxu0 %v1951_v1  ;;  %352 = vmatpush.msrb.mxu2 %v1961_v3  ;;  %v206_v43 = vsel %vm123_vm2, %v205_v41, %v204_v42  ;;  %v283_v14 = vsel %vm120_vm1, %v2002_v10, %v282_v0 }
  0x1d   :  { %142 = vmatpush.msra.mxu1 %v2012_v12  ;;  %224 = vmatpush.msra.mxu3 %v2012_v12  ;;  %v285_v15 = vsel %vm123_vm2, %v284_v13, %v283_v14  ;;  %s824_s19 = scvt.s32.f32 %s823_s0 }
  0x1e   :  { %1645 = vmatmul.msk.f32.vlgmr.msra.gmra.mxu1 %vm88_vm3, %v124_v19  ;;  %273 = vmatpush.msrb.mxu0 %v1961_v3 }
  0x1f   :  { %300 = vmatpush.msrb.mxu1 %v1956_v2  ;;  %379 = vmatpush.msrb.mxu3 %v1956_v2 }
  0x20   :  { %274 = vmatpush.msrb.mxu0 %v1973_v5  ;;  %353 = vmatpush.msrb.mxu2 %v1973_v5 }
  0x21   :  { %301 = vmatpush.msrb.mxu1 %v1968_v4  ;;  %380 = vmatpush.msrb.mxu3 %v1968_v4 }
  0x22   :  { %275 = vmatpush.msrb.mxu0 %v1983_v7  ;;  %354 = vmatpush.msrb.mxu2 %v1983_v7 }
  0x23   :  { %302 = vmatpush.msrb.mxu1 %v1978_v6  ;;  %381 = vmatpush.msrb.mxu3 %v1978_v6 }
  0x24   :  { %430 = vmatpush.msra.mxu0 %v1951_v1  ;;  %1647 = vmatmul.msk.f32.vlgmr.msra.gmra.mxu3 %vm88_vm3, %v206_v43 }
  0x25   :  { %303 = vmatpush.msrb.mxu1 %v2012_v12  ;;  %382 = vmatpush.msrb.mxu3 %v2012_v12 }
  0x26   :  { %431 = vmatpush.msra.mxu0 %v1961_v3  ;;  %1649 = vmatmul.msk.f32.vlgmr.msrb.gmra.mxu1 %vm88_vm3, %v285_v15 }
  0x27   :  { %459 = vmatpush.msra.mxu1 %v1956_v2  ;;  %539 = vmatpush.msra.mxu3 %v1956_v2 }
  0x28   :  { %432 = vmatpush.msra.mxu0 %v1973_v5 }
  0x29   :  { %460 = vmatpush.msra.mxu1 %v1968_v4  ;;  %540 = vmatpush.msra.mxu3 %v1968_v4 }
  0x2a   :  { %433 = vmatpush.msra.mxu0 %v1983_v7 }
  0x2b   :  { %461 = vmatpush.msra.mxu1 %v1978_v6  ;;  %541 = vmatpush.msra.mxu3 %v1978_v6 }
  0x2d   :  { %462 = vmatpush.msra.mxu1 %v2012_v12  ;;  %542 = vmatpush.msra.mxu3 %v2012_v12 }
  0x2f   :  { %619 = vmatpush.msrb.mxu1 %v1956_v2 }
  0x31   :  { %620 = vmatpush.msrb.mxu1 %v1968_v4 }
  0x33   :  { %621 = vmatpush.msrb.mxu1 %v1978_v6 }
  0x35   :  { %622 = vmatpush.msrb.mxu1 %v2012_v12 }
  0x97   :  { %v109_v20 = vpop.f32.mrf.mxu0 }
  0x9b   :  { %v144_v22 = vpop.f32.mrf.mxu1 }
  0x9c   :  { %v145_v23 = vadd.f32 %v144_v22, %v109_v20 }
  0x9e   :  { %v150_v24 = vadd.f32 %v2060_v21, %v145_v23 }
  0xa0   :  { %1701 = vtanh.f32 %v150_v24  ;;  %v151_v26 = vmul.f32 0.5, %v150_v24 }
  0xa2   :  { %1703 = vtanh.f32 %v151_v26 }
  0xa3   :  { %v305_v17 = vpop.f32.mrf.mxu1 }
  0xa6   :  { %v1702_v25 = vpop.eup %1701 }
  0xa7   :  { %158 = vrot.lane.b32.xlu0 %v1702_v25, %s1843_s29  ;;  %v226_v45 = vpop.f32.mrf.mxu3 }
  0xa8   :  { %v1704_v27 = vpop.eup %1703 }
  0xa9   :  { %v153_v28 = vadd.f32 1.0, %v1704_v27 }
  0xab   :  { %v154_v29 = vmul.f32 0.5, %v153_v28 }
  0xad   :  { %v156_v32 = vmul.f32 0.0, %v154_v29 }
 0x119   :  { %v159_v30 = vpop.permute.xlu0 %158 }
 0x11a   :  { %v161_v31 = vmul.f32 %v159_v30, %v154_v29 }
 0x11c   :  { %163 = vrot.lane.b32.xlu0 %v161_v31, %s1844_s30 }
 0x18e   :  { %v164_v33 = vpop.permute.xlu0 %163 }
 0x18f   :  { %v166_v34 = vadd.f32 %v164_v33, %v156_v32 }
 0x191   :  { %1705 = vtanh.f32 %v166_v34 }
 0x197   :  { %v1706_v35 = vpop.eup %1705 }
 0x198   :  { %169 = vrot.lane.b32.xlu1 %v1706_v35, %s1843_s29 }
 0x20a   :  { %v170_v36 = vpop.permute.xlu1 %169 }
 0x20b   :  { %v172_v37 = vmul.f32 %v170_v36, %v154_v29  ;;  %v359_v36 = vrot.slane %v1988_v8, 3 }
 0x20d   :  { %174 = vrot.lane.b32.xlu1 %v172_v37, %s1844_s30  ;;  %v360_v37 = vrot.slane %v1997_v9, 2 }
 0x20f   :  { %v361_v39 = vsel %vm117_vm0, %v360_v37, %v359_v36 }
 0x210   :  { %v363_v40 = vsel %vm120_vm1, %v362_v38, %v361_v39 }
 0x211   :  { %v364_v41 = vsel %vm123_vm2, %v2007_v11, %v363_v40 }
 0x212   :  { %1651 = vmatmul.msk.f32.vlgmr.msrb.gmra.mxu3 %vm88_vm3, %v364_v41 }
 0x213   :  { %699 = vmatpush.msrb.mxu3 %v1956_v2 }
 0x215   :  { %700 = vmatpush.msrb.mxu3 %v1968_v4 }
 0x217   :  { %701 = vmatpush.msrb.mxu3 %v1978_v6 }
 0x219   :  { %702 = vmatpush.msrb.mxu3 %v2012_v12 }
 0x27f   :  { %v175_v44 = vpop.permute.xlu1 %174 }
 0x280   :  { %178 = vst.msk [vmem:[#allocation2] sm:$0xf] %vm177_vm4, %v175_v44  ;;  %1646 = vmatmul.msk.f32.vlgmr.msra.gmra.mxu2 %vm88_vm3, %v175_v44 }
 0x281   :  { %510 = vmatpush.msra.mxu2 %v1951_v1 }
 0x283   :  { %511 = vmatpush.msra.mxu2 %v1961_v3 }
 0x285   :  { %512 = vmatpush.msra.mxu2 %v1973_v5 }
 0x287   :  { %513 = vmatpush.msra.mxu2 %v1983_v7  ;;  %v2130_v44 = vld [vmem:[#allocation2] sm:$0xf] }
 0x288   :  { %v1277_v4 = vrot.slane %v2130_v44, 2 }
 0x303   :  { %v198_v46 = vpop.f32.mrf.mxu2 }
 0x304   :  { %v227_v47 = vadd.f32 %v226_v45, %v198_v46  ;;  %v1070_v45 = vrot.slane %v2130_v44, 1  ;;  %v1484_v46 = vrot.slane %v2130_v44, 3 }
 0x306   :  { %v229_v48 = vadd.f32 %v2060_v21, %v227_v47 }
 0x308   :  { %1707 = vtanh.f32 %v229_v48  ;;  %v230_v50 = vmul.f32 0.5, %v229_v48 }
 0x30a   :  { %1709 = vtanh.f32 %v230_v50 }
 0x30e   :  { %v1708_v49 = vpop.eup %1707 }
 0x30f   :  { %237 = vrot.lane.b32.xlu2 %v1708_v49, %s1843_s29 }
 0x310   :  { %v1710_v51 = vpop.eup %1709 }
 0x311   :  { %v232_v52 = vadd.f32 1.0, %v1710_v51  ;;  %v384_v51 = vpop.f32.mrf.mxu3 }
 0x313   :  { %v233_v53 = vmul.f32 0.5, %v232_v52 }
 0x315   :  { %v235_v56 = vmul.f32 %v233_v53, %v166_v34 }
 0x369   :  { %v238_v54 = vpop.permute.xlu2 %237 }
 0x36a   :  { %v240_v55 = vmul.f32 %v238_v54, %v233_v53 }
 0x36c   :  { %242 = vrot.lane.b32.xlu2 %v240_v55, %s1844_s30 }
 0x3c6   :  { %v243_v57 = vpop.permute.xlu2 %242 }
 0x3c7   :  { %v245_v58 = vadd.f32 %v243_v57, %v235_v56 }
 0x3c9   :  { %1711 = vtanh.f32 %v245_v58 }
 0x3cf   :  { %v1712_v59 = vpop.eup %1711 }
 0x3d0   :  { %248 = vrot.lane.b32.xlu0 %v1712_v59, %s1843_s29 }
 0x442   :  { %v249_v60 = vpop.permute.xlu0 %248 }
 0x443   :  { %v251_v61 = vmul.f32 %v249_v60, %v233_v53 }
 0x445   :  { %253 = vrot.lane.b32.xlu1 %v251_v61, %s1844_s30 }
 0x4b7   :  { %v254_v16 = vpop.permute.xlu1 %253 }
 0x4b8   :  { %257 = vst.msk [vmem:[#allocation2 + $0x4] sm:$0xf] %vm177_vm4, %v254_v16  ;;  %1648 = vmatmul.msk.f32.vlgmr.msrb.gmra.mxu0 %vm88_vm3, %v254_v16  ;;  %v438_v16 = vrot.slane %v1988_v8, 4 }
 0x4b9   :  { %590 = vmatpush.msrb.mxu0 %v1951_v1 }
 0x4bb   :  { %591 = vmatpush.msrb.mxu0 %v1961_v3 }
 0x4bd   :  { %592 = vmatpush.msrb.mxu0 %v1973_v5 }
 0x4bf   :  { %593 = vmatpush.msrb.mxu0 %v1983_v7  ;;  %v2127_v43 = vld [vmem:[#allocation2 + $0x4] sm:$0xf] }
 0x4c0   :  { %v1278_v2 = vrot.slane %v2127_v43, 1  ;;  %v1485_v6 = vrot.slane %v2127_v43, 2  ;;  %v1071_v48 = vsel %vm117_vm0, %v2127_v43, %v1070_v45 }
 0x535   :  { %v277_v19 = vpop.f32.mrf.mxu0 }
 0x536   :  { %v306_v20 = vadd.f32 %v305_v17, %v277_v19  ;;  %v439_v17 = vrot.slane %v1997_v9, 3  ;;  %v441_v19 = vrot.slane %v2002_v10, 2 }
 0x538   :  { %v308_v22 = vadd.f32 %v2060_v21, %v306_v20  ;;  %v440_v20 = vsel %vm117_vm0, %v439_v17, %v438_v16 }
 0x53a   :  { %1713 = vtanh.f32 %v308_v22  ;;  %v309_v24 = vmul.f32 0.5, %v308_v22  ;;  %v443_v22 = vrot.slane %v2007_v11, 1 }
 0x53c   :  { %1715 = vtanh.f32 %v309_v24 }
 0x540   :  { %v1714_v23 = vpop.eup %1713 }
 0x541   :  { %316 = vrot.lane.b32.xlu2 %v1714_v23, %s1843_s29  ;;  %v442_v23 = vsel %vm120_vm1, %v441_v19, %v440_v20 }
 0x542   :  { %v1716_v25 = vpop.eup %1715  ;;  %v444_v24 = vsel %vm123_vm2, %v443_v22, %v442_v23 }
 0x543   :  { %v311_v26 = vadd.f32 1.0, %v1716_v25  ;;  %1653 = vmatmul.msk.f32.vlgmr.msra.gmra.mxu1 %vm88_vm3, %v444_v24 }
 0x545   :  { %v312_v27 = vmul.f32 0.5, %v311_v26 }
 0x547   :  { %v314_v30 = vmul.f32 %v312_v27, %v245_v58 }
 0x59b   :  { %v317_v28 = vpop.permute.xlu2 %316 }
 0x59c   :  { %v319_v29 = vmul.f32 %v317_v28, %v312_v27 }
 0x59e   :  { %321 = vrot.lane.b32.xlu0 %v319_v29, %s1844_s30 }
 0x610   :  { %v322_v31 = vpop.permute.xlu0 %321 }
 0x611   :  { %v324_v32 = vadd.f32 %v322_v31, %v314_v30 }
 0x613   :  { %1717 = vtanh.f32 %v324_v32 }
 0x619   :  { %v1718_v33 = vpop.eup %1717 }
 0x61a   :  { %327 = vrot.lane.b32.xlu1 %v1718_v33, %s1843_s29 }
 0x68c   :  { %v328_v34 = vpop.permute.xlu1 %327 }
 0x68d   :  { %v330_v35 = vmul.f32 %v328_v34, %v312_v27 }
 0x68f   :  { %332 = vrot.lane.b32.xlu2 %v330_v35, %s1844_s30 }
 0x6e9   :  { %v333_v42 = vpop.permute.xlu2 %332 }
 0x6ea   :  { %336 = vst.msk [vmem:[#allocation2 + $0x8] sm:$0xf] %vm177_vm4, %v333_v42  ;;  %1650 = vmatmul.msk.f32.vlgmr.msrb.gmra.mxu2 %vm88_vm3, %v333_v42 }
 0x6eb   :  { %670 = vmatpush.msrb.mxu2 %v1951_v1  ;;  %v1279_v1 = vsel %vm117_vm0, %v1278_v2, %v1277_v4 }
 0x6ed   :  { %671 = vmatpush.msrb.mxu2 %v1961_v3 }
 0x6ef   :  { %672 = vmatpush.msrb.mxu2 %v1973_v5 }
 0x6f1   :  { %673 = vmatpush.msrb.mxu2 %v1983_v7  ;;  %v2138_v12 = vld [vmem:[#allocation2 + $0x8] sm:$0xf]  ;;  %v1486_v7 = vsel %vm117_vm0, %v1485_v6, %v1484_v46 }
 0x6f2   :  { %v1072_v3 = vrot.slane %v2138_v12, 7  ;;  %v1280_v47 = vsel %vm120_vm1, %v2138_v12, %v1279_v1  ;;  %v1487_v5 = vrot.slane %v2138_v12, 1 }
 0x6f4   :  { %v1073_v49 = vsel %vm120_vm1, %v1072_v3, %v1071_v48  ;;  %v1488_v50 = vsel %vm120_vm1, %v1487_v5, %v1486_v7  ;;  %v518_v3 = vrot.slane %v1988_v8, 5  ;;  %v521_v5 = vrot.slane %v2002_v10, 3 }
 0x6f5   :  { %v523_v7 = vrot.slane %v2007_v11, 2 }
 0x76d   :  { %v356_v52 = vpop.f32.mrf.mxu2 }
 0x76e   :  { %v385_v53 = vadd.f32 %v384_v51, %v356_v52 }
 0x770   :  { %v387_v54 = vadd.f32 %v2060_v21, %v385_v53 }
 0x772   :  { %1719 = vtanh.f32 %v387_v54  ;;  %v388_v56 = vmul.f32 0.5, %v387_v54 }
 0x774   :  { %1721 = vtanh.f32 %v388_v56 }
 0x778   :  { %v1720_v55 = vpop.eup %1719 }
 0x779   :  { %395 = vrot.lane.b32.xlu0 %v1720_v55, %s1843_s29 }
 0x77a   :  { %v1722_v57 = vpop.eup %1721 }
 0x77b   :  { %v390_v58 = vadd.f32 1.0, %v1722_v57 }
 0x77d   :  { %v391_v59 = vmul.f32 0.5, %v390_v58 }
 0x77f   :  { %v393_v62 = vmul.f32 %v391_v59, %v324_v32  ;;  %v464_v32 = vpop.f32.mrf.mxu1 }
 0x7eb   :  { %v396_v60 = vpop.permute.xlu0 %395 }
 0x7ec   :  { %v398_v61 = vmul.f32 %v396_v60, %v391_v59 }
 0x7ee   :  { %400 = vrot.lane.b32.xlu1 %v398_v61, %s1844_s30 }
 0x860   :  { %v401_v63 = vpop.permute.xlu1 %400 }
 0x861   :  { %v403_v0 = vadd.f32 %v401_v63, %v393_v62 }
 0x863   :  { %1723 = vtanh.f32 %v403_v0 }
 0x869   :  { %v1724_v13 = vpop.eup %1723 }
 0x86a   :  { %406 = vrot.lane.b32.xlu2 %v1724_v13, %s1843_s29 }
 0x8c4   :  { %v407_v14 = vpop.permute.xlu2 %406 }
 0x8c5   :  { %v409_v15 = vmul.f32 %v407_v14, %v391_v59 }
 0x8c7   :  { %411 = vrot.lane.b32.xlu0 %v409_v15, %s1844_s30 }
 0x939   :  { %v412_v25 = vpop.permute.xlu0 %411 }
 0x93a   :  { %415 = vst.msk [vmem:[#allocation2 + $0xc] sm:$0xf] %vm177_vm4, %v412_v25  ;;  %1652 = vmatmul.msk.f32.vlgmr.msra.gmra.mxu0 %vm88_vm3, %v412_v25 }
 0x941   :  { %v2167_v26 = vld [vmem:[#allocation2 + $0xc] sm:$0xf] }
 0x942   :  { %v1074_v27 = vrot.slane %v2167_v26, 6  ;;  %v1281_v28 = vrot.slane %v2167_v26, 7  ;;  %v1489_v29 = vsel %vm123_vm2, %v2167_v26, %v1488_v50 }
 0x944   :  { %v1075_v30 = vsel %vm123_vm2, %v1074_v27, %v1073_v49  ;;  %v1282_v31 = vsel %vm123_vm2, %v1281_v28, %v1280_v47  ;;  %v519_v47 = vrot.slane %v1997_v9, 4  ;;  %v598_v27 = vrot.slane %v1988_v8, 6 }
 0x945   :  { %v599_v28 = vrot.slane %v1997_v9, 5 }
 0x946   :  { %v520_v48 = vsel %vm117_vm0, %v519_v47, %v518_v3 }
 0x947   :  { %v522_v49 = vsel %vm120_vm1, %v521_v5, %v520_v48 }
 0x948   :  { %v524_v50 = vsel %vm123_vm2, %v523_v7, %v522_v49 }
 0x949   :  { %1655 = vmatmul.msk.f32.vlgmr.msra.gmra.mxu3 %vm88_vm3, %v524_v50 }
 0x9b7   :  { %v435_v33 = vpop.f32.mrf.mxu0 }
 0x9b8   :  { %v465_v34 = vadd.f32 %v464_v32, %v435_v33 }
 0x9ba   :  { %v467_v35 = vadd.f32 %v2060_v21, %v465_v34 }
 0x9bc   :  { %1725 = vtanh.f32 %v467_v35  ;;  %v468_v37 = vmul.f32 0.5, %v467_v35 }
 0x9be   :  { %1727 = vtanh.f32 %v468_v37 }
 0x9c2   :  { %v1726_v36 = vpop.eup %1725 }
 0x9c3   :  { %475 = vrot.lane.b32.xlu1 %v1726_v36, %s1843_s29 }
 0x9c4   :  { %v1728_v38 = vpop.eup %1727 }
 0x9c5   :  { %v470_v39 = vadd.f32 1.0, %v1728_v38 }
 0x9c7   :  { %v471_v40 = vmul.f32 0.5, %v470_v39 }
 0x9c9   :  { %v473_v2 = vmul.f32 %v471_v40, %v403_v0 }
 0x9cc   :  { %v544_v59 = vpop.f32.mrf.mxu3 }
 0xa35   :  { %v476_v41 = vpop.permute.xlu1 %475 }
 0xa36   :  { %v478_v42 = vmul.f32 %v476_v41, %v471_v40 }
 0xa38   :  { %480 = vrot.lane.b32.xlu2 %v478_v42, %s1844_s30 }
 0xa92   :  { %v481_v4 = vpop.permute.xlu2 %480 }
 0xa93   :  { %v483_v6 = vadd.f32 %v481_v4, %v473_v2 }
 0xa95   :  { %1729 = vtanh.f32 %v483_v6 }
 0xa9b   :  { %v1730_v45 = vpop.eup %1729 }
 0xa9c   :  { %486 = vrot.lane.b32.xlu0 %v1730_v45, %s1843_s29 }
 0xb0e   :  { %v487_v1 = vpop.permute.xlu0 %486 }
 0xb0f   :  { %v489_v46 = vmul.f32 %v487_v1, %v471_v40 }
 0xb11   :  { %491 = vrot.lane.b32.xlu1 %v489_v46, %s1844_s30 }
 0xb83   :  { %v492_v51 = vpop.permute.xlu1 %491 }
 0xb84   :  { %495 = vst.msk [vmem:[#allocation2 + $0x10] sm:$0xf] %vm177_vm4, %v492_v51  ;;  %1654 = vmatmul.msk.f32.vlgmr.msra.gmra.mxu2 %vm88_vm3, %v492_v51 }
 0xb8b   :  { %v2190_v52 = vld [vmem:[#allocation2 + $0x10] sm:$0xf] }
 0xb8c   :  { %v1076_v53 = vrot.slane %v2190_v52, 5  ;;  %v1283_v54 = vrot.slane %v2190_v52, 6  ;;  %v1490_v55 = vrot.slane %v2190_v52, 7 }
 0xb8e   :  { %v1077_v56 = vsel %vm858_vm5, %v1076_v53, %v1075_v30  ;;  %v1284_v57 = vsel %vm858_vm5, %v1283_v54, %v1282_v31  ;;  %v1491_v58 = vsel %vm858_vm5, %v1490_v55, %v1489_v29  ;;  %v601_v29 = vrot.slane %v2002_v10, 4 }
 0xb8f   :  { %v600_v30 = vsel %vm117_vm0, %v599_v28, %v598_v27  ;;  %v603_v31 = vrot.slane %v2007_v11, 3  ;;  %v678_v55 = vrot.slane %v1988_v8, 7 }
 0xb90   :  { %v602_v32 = vsel %vm120_vm1, %v601_v29, %v600_v30 }
 0xb91   :  { %v604_v33 = vsel %vm123_vm2, %v603_v31, %v602_v32 }
 0xb92   :  { %1657 = vmatmul.msk.f32.vlgmr.msrb.gmra.mxu1 %vm88_vm3, %v604_v33 }
 0xc07   :  { %v515_v60 = vpop.f32.mrf.mxu2 }
 0xc08   :  { %v545_v61 = vadd.f32 %v544_v59, %v515_v60  ;;  %v683_v59 = vrot.slane %v2007_v11, 4 }
 0xc0a   :  { %v547_v62 = vadd.f32 %v2060_v21, %v545_v61 }
 0xc0c   :  { %1731 = vtanh.f32 %v547_v62  ;;  %v548_v0 = vmul.f32 0.5, %v547_v62 }
 0xc0e   :  { %1733 = vtanh.f32 %v548_v0 }
 0xc0f   :  { %v624_v42 = vpop.f32.mrf.mxu1 }
 0xc12   :  { %v1732_v63 = vpop.eup %1731 }
 0xc13   :  { %555 = vrot.lane.b32.xlu2 %v1732_v63, %s1843_s29 }
 0xc14   :  { %v1734_v13 = vpop.eup %1733 }
 0xc15   :  { %v550_v14 = vadd.f32 1.0, %v1734_v13 }
 0xc17   :  { %v551_v15 = vmul.f32 0.5, %v550_v14 }
 0xc19   :  { %v553_v19 = vmul.f32 %v551_v15, %v483_v6 }
 0xc6d   :  { %v556_v16 = vpop.permute.xlu2 %555 }
 0xc6e   :  { %v558_v17 = vmul.f32 %v556_v16, %v551_v15 }
 0xc70   :  { %560 = vrot.lane.b32.xlu0 %v558_v17, %s1844_s30 }
 0xce2   :  { %v561_v20 = vpop.permute.xlu0 %560 }
 0xce3   :  { %v563_v22 = vadd.f32 %v561_v20, %v553_v19 }
 0xce5   :  { %1735 = vtanh.f32 %v563_v22 }
 0xceb   :  { %v1736_v23 = vpop.eup %1735 }
 0xcec   :  { %566 = vrot.lane.b32.xlu1 %v1736_v23, %s1843_s29 }
 0xd5e   :  { %v567_v24 = vpop.permute.xlu1 %566 }
 0xd5f   :  { %v569_v25 = vmul.f32 %v567_v24, %v551_v15 }
 0xd61   :  { %571 = vrot.lane.b32.xlu2 %v569_v25, %s1844_s30 }
 0xdbb   :  { %v572_v34 = vpop.permute.xlu2 %571 }
 0xdbc   :  { %575 = vst.msk [vmem:[#allocation2 + $0x14] sm:$0xf] %vm177_vm4, %v572_v34  ;;  %1656 = vmatmul.msk.f32.vlgmr.msrb.gmra.mxu0 %vm88_vm3, %v572_v34 }
 0xdc3   :  { %v2213_v35 = vld [vmem:[#allocation2 + $0x14] sm:$0xf] }
 0xdc4   :  { %v1078_v36 = vrot.slane %v2213_v35, 4  ;;  %v1285_v37 = vrot.slane %v2213_v35, 5  ;;  %v1492_v38 = vrot.slane %v2213_v35, 6 }
 0xdc6   :  { %v1079_v39 = vsel %vm861_vm6, %v1078_v36, %v1077_v56  ;;  %v1286_v40 = vsel %vm861_vm6, %v1285_v37, %v1284_v57  ;;  %v1493_v41 = vsel %vm861_vm6, %v1492_v38, %v1491_v58  ;;  %v679_v56 = vrot.slane %v1997_v9, 6 }
 0xdc7   :  { %v681_v57 = vrot.slane %v2002_v10, 5 }
 0xdc8   :  { %v680_v58 = vsel %vm117_vm0, %v679_v56, %v678_v55  ;;  %v855_v55 = vrot.slane %v2167_v26, 5  ;;  %v857_v56 = vrot.slane %v2190_v52, 4 }
 0xdc9   :  { %v682_v60 = vsel %vm120_vm1, %v681_v57, %v680_v58  ;;  %v860_v57 = vrot.slane %v2213_v35, 3 }
 0xdca   :  { %v684_v61 = vsel %vm123_vm2, %v683_v59, %v682_v60 }
 0xdcb   :  { %1659 = vmatmul.msk.f32.vlgmr.msrb.gmra.mxu3 %vm88_vm3, %v684_v61 }
 0xe39   :  { %v595_v2 = vpop.f32.mrf.mxu0 }
 0xe3a   :  { %v625_v4 = vadd.f32 %v624_v42, %v595_v2 }
 0xe3c   :  { %v627_v6 = vadd.f32 %v2060_v21, %v625_v4 }
 0xe3e   :  { %1737 = vtanh.f32 %v627_v6  ;;  %v628_v1 = vmul.f32 0.5, %v627_v6  ;;  %v2262_v6 = vld [vmem:[%s2628_s12 + $0x18] sm:$0xff] }
 0xe3f   :  { %913 = vmatpush.msra.mxu2 %v2262_v6 }
 0xe40   :  { %1739 = vtanh.f32 %v628_v1  ;;  %v2274_v1 = vld [vmem:[%s2628_s12 + $0x8] sm:$0xff] }
 0xe44   :  { %v1738_v45 = vpop.eup %1737 }
 0xe45   :  { %635 = vrot.lane.b32.xlu0 %v1738_v45, %s1843_s29  ;;  %v2268_v45 = vld [vmem:[%s2628_s12 + $0x10] sm:$0xff] }
 0xe46   :  { %v1740_v46 = vpop.eup %1739  ;;  %914 = vmatpush.msra.mxu2 %v2268_v45 }
 0xe47   :  { %v630_v3 = vadd.f32 1.0, %v1740_v46  ;;  %v2280_v46 = vld [vmem:[%s2629_s13 + $0x18] sm:$0xff] }
 0xe48   :  { %915 = vmatpush.msra.mxu2 %v2274_v1  ;;  %890 = vmatpush.msra.mxu1 %v2280_v46 }
 0xe49   :  { %v631_v47 = vmul.f32 0.5, %v630_v3  ;;  %v2285_v3 = vld [vmem:[%s2628_s12] sm:$0xff] }
 0xe4a   :  { %916 = vmatpush.msra.mxu2 %v2285_v3 }
 0xe4b   :  { %v633_v7 = vmul.f32 %v631_v47, %v563_v22 }
 0xe4e   :  { %v704_v14 = vpop.f32.mrf.mxu3 }
 0xeb7   :  { %v636_v5 = vpop.permute.xlu0 %635 }
 0xeb8   :  { %v638_v48 = vmul.f32 %v636_v5, %v631_v47  ;;  %v813_v5 = vlaneseq }
 0xeba   :  { %640 = vrot.lane.b32.xlu1 %v638_v48, %s1844_s30  ;;  %v2297_v48 = vld [vmem:[%s2629_s13 + $0x8] sm:$0xff] }
 0xf2c   :  { %v641_v49 = vpop.permute.xlu1 %640 }
 0xf2d   :  { %v643_v50 = vadd.f32 %v641_v49, %v633_v7  ;;  %v2304_v7 = vld [vmem:[%s2629_s13] sm:$0xff]  ;;  %v2308_v49 = vshrl.u32 %v813_v5, 7 }
 0xf2f   :  { %1741 = vtanh.f32 %v643_v50 }
 0xf35   :  { %v1742_v51 = vpop.eup %1741 }
 0xf36   :  { %646 = vrot.lane.b32.xlu2 %v1742_v51, %s1843_s29 }
 0xf90   :  { %v647_v53 = vpop.permute.xlu2 %646 }
 0xf91   :  { %v649_v54 = vmul.f32 %v647_v53, %v631_v47  ;;  %v2290_v47 = vld [vmem:[%s2629_s13 + $0x10] sm:$0xff]  ;;  %v851_v53 = vrot.slane %v2127_v43, 7 }
 0xf92   :  { %891 = vmatpush.msra.mxu1 %v2290_v47 }
 0xf93   :  { %651 = vrot.lane.b32.xlu0 %v649_v54, %s1844_s30  ;;  %v853_v54 = vrot.slane %v2138_v12, 6  ;;  %v852_v43 = vsel %vm117_vm0, %v851_v53, %v2130_v44  ;;  %v2385_v53 = vld [vmem:[%s2623_s7 + $0x8] sm:$0xff] }
 0xf94   :  { %892 = vmatpush.msra.mxu1 %v2297_v48 }
 0xf95   :  { %v854_v12 = vsel %vm120_vm1, %v853_v54, %v852_v43  ;;  %v2393_v54 = vld [vmem:[%s2631_s15] sm:$0xff] }
 0xf96   :  { %893 = vmatpush.msra.mxu1 %v2304_v7  ;;  %v856_v60 = vsel %vm123_vm2, %v855_v55, %v854_v12  ;;  %v2398_v55 = vld [vmem:[%s2623_s7] sm:$0xff] }
 0xf97   :  { %894 = vmatmul.f32.vlgmr.msra.gmra.mxu1 %v1842_v18 }
0x1005   :  { %v652_v62 = vpop.permute.xlu0 %651 }
0x1006   :  { %655 = vst.msk [vmem:[#allocation2 + $0x18] sm:$0xf] %vm177_vm4, %v652_v62  ;;  %1658 = vmatmul.msk.f32.vlgmr.msrb.gmra.mxu2 %vm88_vm3, %v652_v62  ;;  %v859_v62 = vsel %vm858_vm5, %v857_v56, %v856_v60  ;;  %vm1043_vm5 = vcmask 7168  }
0x1007   :  { %1105 = vmatpush.msrb.mxu2 %v2280_v46  ;;  %v862_v52 = vsel %vm861_vm6, %v860_v57, %v859_v62 }
0x1009   :  { %1106 = vmatpush.msrb.mxu2 %v2290_v47 }
0x100b   :  { %1107 = vmatpush.msrb.mxu2 %v2297_v48 }
0x100d   :  { %v2236_v8 = vld [vmem:[#allocation2 + $0x18] sm:$0xf]  ;;  %1108 = vmatpush.msrb.mxu2 %v2304_v7 }
0x100e   :  { %v1080_v9 = vrot.slane %v2236_v8, 3  ;;  %v1287_v10 = vrot.slane %v2236_v8, 4  ;;  %v1494_v11 = vrot.slane %v2236_v8, 5  ;;  %v863_v61 = vrot.slane %v2236_v8, 2 }
0x1010   :  { %v2242_v63 = vsel %vm864_vm7, %v1080_v9, %v1079_v39  ;;  %v2245_v0 = vsel %vm864_vm7, %v1287_v10, %v1286_v40  ;;  %v2248_v13 = vsel %vm864_vm7, %v1494_v11, %v1493_v41 }
0x1089   :  { %v675_v15 = vpop.f32.mrf.mxu2 }
0x108a   :  { %v705_v16 = vadd.f32 %v704_v14, %v675_v15  ;;  %v865_v14 = vsel %vm864_vm7, %v863_v61, %v862_v52  ;;  %v2442_v61 = vand.u32 127, %v813_v5  ;;  %v750_v5 = vld [vmem:[%s2621_s5 + $0x8] sm:$0xff] }
0x108c   :  { %v707_v17 = vadd.f32 %v2060_v21, %v705_v16  ;;  %v825_v21 = vstv %s824_s19 }
0x108d   :  { %v837_v34 = vand.u32 2147483648, %v825_v21  ;;  %vm831_vm8 = vweird.f32 %v825_v21  ;;  %v835_v37 = vand.u32 2147483647, %v825_v21 }
0x108e   :  { %1743 = vtanh.f32 %v707_v17  ;;  %v708_v20 = vmul.f32 0.5, %v707_v17 }
0x108f   :  { %v838_v39 = vor.u32 1.1754944e-38, %v837_v34  ;;  %vm836_vm11 = vcmp.eq.f32.partialorder %v835_v37, 8.507059e+37 }
0x1090   :  { %1745 = vtanh.f32 %v708_v20 }
0x1094   :  { %v1744_v19 = vpop.eup %1743 }
0x1095   :  { %715 = vrot.lane.b32.xlu1 %v1744_v19, %s1843_s29 }
0x1096   :  { %v1746_v22 = vpop.eup %1745 }
0x1097   :  { %v710_v23 = vadd.f32 1.0, %v1746_v22 }
0x1099   :  { %v711_v24 = vmul.f32 0.5, %v710_v23 }
0x109b   :  { %v713_v28 = vmul.f32 %v711_v24, %v643_v50  ;;  %v818_v50 = vstv %s2254_s4 }
0x109c   :  { %vm819_vm12 = vcmp.lt.s32.totalorder %v2308_v49, %v818_v50  ;;  %v2375_v50 = vld [vmem:[%s2623_s7 + $0x10] sm:$0xff] }
0x109d   :  { %v1664_v58 = vsel %vm819_vm12, 1.0, %v1842_v18 }
0x1107   :  { %v716_v25 = vpop.permute.xlu1 %715 }
0x1108   :  { %v718_v27 = vmul.f32 %v716_v25, %v711_v24 }
0x110a   :  { %720 = vrot.lane.b32.xlu2 %v718_v27, %s1844_s30 }
0x1164   :  { %v721_v29 = vpop.permute.xlu2 %720 }
0x1165   :  { %v723_v30 = vadd.f32 %v721_v29, %v713_v28  ;;  %v895_v29 = vpop.f32.mrf.mxu1 }
0x1167   :  { %1747 = vtanh.f32 %v723_v30 }
0x1168   :  { %1749 = vrcp.f32 %v825_v21 }
0x116d   :  { %v1748_v31 = vpop.eup %1747 }
0x116e   :  { %726 = vrot.lane.b32.xlu0 %v1748_v31, %s1843_s29  ;;  %v1750_v32 = vpop.eup %1749 }
0x116f   :  { %v827_v33 = vmul.f32 %v1750_v32, %v825_v21  ;;  %vm832_vm9 = vweird.f32 %v1750_v32 }
0x1170   :  { %vm833_vm10 = vmor %vm831_vm8, %vm832_vm9 }
0x1171   :  { %v828_v36 = vsub.f32 1.0, %v827_v33 }
0x1173   :  { %v829_v38 = vmul.f32 %v1750_v32, %v828_v36 }
0x1175   :  { %v830_v40 = vadd.f32 %v1750_v32, %v829_v38 }
0x1177   :  { %v834_v41 = vsel %vm833_vm10, %v1750_v32, %v830_v40 }
0x1178   :  { %v839_v42 = vsel %vm836_vm11, %v838_v39, %v834_v41 }
0x1179   :  { %1688 = vpush %v839_v42  ;;  %v2358_v42 = vld [vmem:[%s2631_s15 + $0x18] sm:$0xff] }
0x117a   :  { %961 = vmatpush.msra.mxu3 %v2358_v42 }
0x11aa   :  { %s1689_s13 = spop %1688 }
0x11ab   :  { %v841_v59 = vstv %s1689_s13 }
0x11ac   :  { %v842_v26 = vmul.f32 %v1664_v58, %v841_v59  ;;  %v2434_v58 = vld [vmem:[%s2632_s16] sm:$0x1]  ;;  %s1682_s16 = sld [smem:[#allocation4 + $0x3]] }
0x11e0   :  { %v727_v2 = vpop.permute.xlu0 %726 }
0x11e1   :  { %v729_v4 = vmul.f32 %v727_v2, %v711_v24  ;;  %v2363_v2 = vld [vmem:[%s2623_s7 + $0x18] sm:$0xff] }
0x11e2   :  { %1019 = vmatpush.msrb.mxu1 %v2363_v2 }
0x11e3   :  { %731 = vrot.lane.b32.xlu1 %v729_v4, %s1844_s30  ;;  %v2368_v4 = vld [vmem:[%s2631_s15 + $0x10] sm:$0xff] }
0x11e4   :  { %962 = vmatpush.msra.mxu3 %v2368_v4  ;;  %1020 = vmatpush.msrb.mxu1 %v2375_v50 }
0x11e6   :  { %1021 = vmatpush.msrb.mxu1 %v2385_v53 }
0x11e8   :  { %1022 = vmatpush.msrb.mxu1 %v2398_v55 }
0x11ea   :  { %1176 = vmatpush.msra.mxu1 %v2358_v42 }
0x11ec   :  { %1177 = vmatpush.msra.mxu1 %v2368_v4 }
0x1255   :  { %v732_v51 = vpop.permute.xlu1 %731 }
0x1256   :  { %735 = vst.msk [vmem:[#allocation2 + $0x1c] sm:$0xf] %vm177_vm4, %v732_v51  ;;  %v2380_v51 = vld [vmem:[%s2631_s15 + $0x8] sm:$0xff] }
0x1257   :  { %963 = vmatpush.msra.mxu3 %v2380_v51  ;;  %1178 = vmatpush.msra.mxu1 %v2380_v51 }
0x1259   :  { %964 = vmatpush.msra.mxu3 %v2393_v54  ;;  %1179 = vmatpush.msra.mxu1 %v2393_v54 }
0x125b   :  { %1128 = vmatpush.msrb.mxu3 %v2262_v6 }
0x125d   :  { %v743_v9 = vld [vmem:[#allocation2 + $0x1c] sm:$0xf]  ;;  %1129 = vmatpush.msrb.mxu3 %v2268_v45 }
0x125e   :  { %v866_v10 = vrot.slane %v743_v9, 1  ;;  %v1082_v44 = vrot.slane %v743_v9, 2  ;;  %v1289_v11 = vrot.slane %v743_v9, 3  ;;  %v1496_v35 = vrot.slane %v743_v9, 4 }
0x125f   :  { %1130 = vmatpush.msrb.mxu3 %v2274_v1 }
0x1260   :  { %v868_v15 = vsel %vm867_vm13, %v866_v10, %v865_v14  ;;  %v2333_v16 = vsel %vm867_vm13, %v1082_v44, %v2242_v63  ;;  %v2336_v17 = vsel %vm867_vm13, %v1289_v11, %v2245_v0  ;;  %v2339_v8 = vsel %vm867_vm13, %v1496_v35, %v2248_v13  ;;  %v2346_v63 = vld [vmem:[%s2630_s14] sm:$0x1]  ;;  %v752_v44 = vld [vmem:[%s2621_s5 + $0x18] sm:$0xff]  ;;  %v751_v11 = vld [vmem:[%s2621_s5 + $0x10] sm:$0xff]  ;;  %s1635_s14 = sshll.u32 %s2634_s18, 4  ;;  %s1636_s14 = int_to_ptr.hbm [resolvable:$true] %s1635_s14 }
0x1261   :  { %v870_v19 = vmul.f32 %v868_v15, %v842_v26  ;;  %1131 = vmatpush.msrb.mxu3 %v2285_v3  ;;  %776 = vmatpush.msra.mxu0 %v752_v44  ;;  %v749_v35 = vld [vmem:[%s2621_s5] sm:$0xff]  ;;  %v1798_v15 = vld [vmem:[%s2642_s21 + $0x8] sm:$0xff] }
0x1262   :  { %v1797_v14 = vld [vmem:[%s2642_s21] sm:$0xff] }
0x1263   :  { %v871_v20 = vsel %vm88_vm3, %v870_v19, 0.0  ;;  %777 = vmatpush.msra.mxu0 %v751_v11  ;;  %v1799_v19 = vld [vmem:[%s2642_s21 + $0x10] sm:$0xff] }
0x1264   :  { %v872_v22 = vrot.slane %v871_v20, 4 }
0x1265   :  { %778 = vmatpush.msra.mxu0 %v750_v5  ;;  %v1845_v5 = vmov 0  }
0x1266   :  { %v873_v23 = vadd.f32 %v872_v22, %v871_v20  ;;  %1696 = vset.pattern.permute.xlu0 %v1845_v5  ;;  %1697 = vset.pattern.permute.xlu2 %v1845_v5 }
0x1267   :  { %779 = vmatpush.msra.mxu0 %v749_v35  ;;  %v2507_v35 = vld [vmem:[#allocation3] ss:$0 sm:$0xff] }
0x1268   :  { %v874_v24 = vrot.slane %v873_v23, 2  ;;  %1660 = vmatmul.msk.f32.vlgmr.msra.gmra.mxu0 %vm88_vm3, %v1797_v14 }
0x1269   :  { %1519 = vmatpush.msrb.mxu0 %v2280_v46 }
0x126a   :  { %v875_v25 = vadd.f32 %v874_v24, %v873_v23 }
0x126b   :  { %1520 = vmatpush.msrb.mxu0 %v2290_v47 }
0x126c   :  { %v876_v27 = vrot.slane %v875_v25, 1 }
0x126d   :  { %1521 = vmatpush.msrb.mxu0 %v2297_v48 }
0x126e   :  { %v877_v28 = vadd.f32 %v876_v27, %v875_v25 }
0x126f   :  { %1522 = vmatpush.msrb.mxu0 %v2304_v7 }
0x1270   :  { %1665 = vmatmul.msk.f32.vlgmr.msra.gmra.mxu2 %vm88_vm3, %v877_v28  ;;  %1661 = vmatmul.msk.f32.gmra.mxu0 %vm88_vm3, %v1798_v15 }
0x1271   :  { %1233 = vmatpush.msra.mxu2 %v2363_v2 }
0x1273   :  { %1234 = vmatpush.msra.mxu2 %v2375_v50 }
0x1275   :  { %1235 = vmatpush.msra.mxu2 %v2385_v53 }
0x1277   :  { %1236 = vmatpush.msra.mxu2 %v2398_v55 }
0x1278   :  { %1662 = vmatmul.msk.f32.gmra.mxu0 %vm88_vm3, %v1799_v19 }
0x12f3   :  { %v918_v0 = vpop.f32.mrf.mxu2 }
0x12f4   :  { %v919_v13 = vadd.f32 %v918_v0, %v895_v29  ;;  %v2482_v0 = vld [vmem:[%s2633_s17] sm:$0xff] }
0x12f6   :  { %v921_v30 = vadd.f32 %v919_v13, %v2346_v63 }
0x12f8   :  { %1751 = vtanh.f32 %v921_v30  ;;  %v922_v21 = vmul.f32 0.5, %v921_v30 }
0x12fa   :  { %1753 = vtanh.f32 %v922_v21  ;;  %v745_v21 = vld [vmem:[%s2624_s8] sm:$0x1] }
0x12fe   :  { %v1752_v31 = vpop.eup %1751 }
0x12ff   :  { %929 = vrot.lane.b32.xlu2 %v1752_v31, %s1843_s29  ;;  %v744_v31 = vld [vmem:[%s2622_s6] sm:$0x1] }
0x1300   :  { %v1754_v32 = vpop.eup %1753 }
0x1301   :  { %v924_v33 = vadd.f32 1.0, %v1754_v32 }
0x1303   :  { %v925_v34 = vmul.f32 0.5, %v924_v33 }
0x1305   :  { %v927_v38 = vmul.f32 0.0, %v925_v34 }
0x1359   :  { %v930_v36 = vpop.permute.xlu2 %929 }
0x135a   :  { %v932_v37 = vmul.f32 %v930_v36, %v925_v34  ;;  %v747_v36 = vld [vmem:[%s2625_s9] sm:$0x1]  ;;  %s1668_s9 = sld [smem:[#allocation4 + $0x1]] }
0x135c   :  { %934 = vrot.lane.b32.xlu0 %v932_v37, %s1844_s30 }
0x1360   :  { %v1003_v14 = vstv %s1668_s9 }
0x1361   :  { %vm1004_vm2 = vcmp.lt.s32.totalorder %v2308_v49, %v1003_v14 }
0x13ce   :  { %v935_v39 = vpop.permute.xlu0 %934 }
0x13cf   :  { %v2351_v40 = vadd.f32 %v935_v39, %v927_v38 }
0x13d1   :  { %1755 = vtanh.f32 %v2351_v40 }
0x13d7   :  { %v1756_v41 = vpop.eup %1755 }
0x13d8   :  { %940 = vrot.lane.b32.xlu1 %v1756_v41, %s1843_s29 }
0x144a   :  { %v941_v56 = vpop.permute.xlu1 %940 }
0x144b   :  { %v943_v43 = vmul.f32 %v941_v56, %v925_v34  ;;  %v746_v34 = vadd.f32 %v745_v21, %v744_v31 }
0x144d   :  { %945 = vrot.lane.b32.xlu2 %v943_v43, %s1844_s30  ;;  %v748_v38 = vadd.f32 %v747_v36, %v746_v34 }
0x144f   :  { %v2497_v56 = vperm.slane %v748_v38, 0 }
0x14a7   :  { %v946_v57 = vpop.permute.xlu2 %945 }
0x14a8   :  { %1666 = vmatmul.msk.f32.vlgmr.msra.gmra.mxu3 %vm88_vm3, %v946_v57  ;;  %1670 = vmatmul.msk.f32.vlgmr.msrb.gmra.mxu1 %vm88_vm3, %v946_v57 }
0x14a9   :  { %1671 = vmatmul.msk.f32.vlgmr.msrb.gmra.mxu2 %vm88_vm3, %v946_v57  ;;  %1312 = vmatpush.msra.mxu3 %v2280_v46 }
0x14aa   :  { %1335 = vmatpush.msrb.mxu1 %v2262_v6  ;;  %1383 = vmatpush.msrb.mxu2 %v2358_v42 }
0x14ab   :  { %1313 = vmatpush.msra.mxu3 %v2290_v47 }
0x14ac   :  { %1336 = vmatpush.msrb.mxu1 %v2268_v45  ;;  %1384 = vmatpush.msrb.mxu2 %v2368_v4 }
0x14ad   :  { %1314 = vmatpush.msra.mxu3 %v2297_v48  ;;  %v1800_v48 = vld [vmem:[%s2642_s21 + $0x18] sm:$0xff] }
0x14ae   :  { %1337 = vmatpush.msrb.mxu1 %v2274_v1  ;;  %1385 = vmatpush.msrb.mxu2 %v2380_v51 }
0x14af   :  { %1315 = vmatpush.msra.mxu3 %v2304_v7  ;;  %1663 = vmatmul.msk.f32.gmra.mxu0 %vm88_vm3, %v1800_v48  ;;  %v781_v7 = vpop.f32.mrf.mxu0 }
0x14b0   :  { %1338 = vmatpush.msrb.mxu1 %v2285_v3  ;;  %1386 = vmatpush.msrb.mxu2 %v2393_v54 }
0x14b7   :  { %v783_v57 = vpop.f32.mrf.mxu0 }
0x152b   :  { %v966_v59 = vpop.f32.mrf.mxu3 }
0x152c   :  { %v2437_v12 = vadd.f32 %v966_v59, %v2434_v58 }
0x152e   :  { %v970_v60 = vsel %vm969_vm14, %v2437_v12, -inf }
0x152f   :  { %971 = vmax.xlane.f32.xlu0 %v970_v60  ;;  %v1024_v60 = vpop.f32.mrf.mxu1 }
0x15a2   :  { %v972_v62 = vpop.xlane.xlu0 %971 }
0x15a3   :  { %vm973_vm15 = vcmp.ge.f32.partialorder %v2437_v12, %v972_v62  ;;  %v784_v62 = vadd.f32 %v783_v57, %v2497_v56 }
0x15a4   :  { %v974_v9 = vsel %vm973_vm15, %v2442_v61, 8 }
0x15a5   :  { %v975_v26 = vsel %vm969_vm14, %v974_v9, 2147483647 }
0x15a6   :  { %v977_v52 = vshra.s32 %v975_v26, 16  ;;  %v976_v20 = vand.u32 65535, %v975_v26 }
0x15a8   :  { %v979_v10 = vcvt.s32.f32 %v977_v52  ;;  %v978_v22 = vcvt.s32.f32 %v976_v20  ;;  %v2503_v52 = vld [vmem:[%s2626_s10] ss:$0 sm:$0xff]  ;;  %v1669_v20 = vsel %vm1004_vm2, 1.0, %v1842_v18  ;;  %s1675_s10 = sld [smem:[#allocation4 + $0x2]]  ;;  %vm1611_vm2 = vcmask 1042432  }
0x15a9   :  { %vm1041_vm4 = vcmp.gt.f32.partialorder %v1669_v20, 0.0 }
0x15aa   :  { %980 = vmin.xlane.f32.xlu1 %v979_v10 }
0x161d   :  { %v981_v46 = vpop.xlane.xlu1 %980 }
0x161e   :  { %vm982_vm0 = vcmp.eq.f32.partialorder %v979_v10, %v981_v46  ;;  %v987_v23 = vcvt.f32.s32 %v981_v46 }
0x161f   :  { %v983_v47 = vsel %vm982_vm0, %v978_v22, inf  ;;  %vm1607_vm0 = vcmask 1040384  }
0x1620   :  { %984 = vmin.xlane.f32.xlu2 %v983_v47  ;;  %v988_v25 = vshll.u32 %v987_v23, 16 }
0x1693   :  { %v985_v24 = vpop.xlane.xlu2 %984 }
0x1694   :  { %v986_v27 = vcvt.f32.s32 %v985_v24 }
0x1696   :  { %v989_v28 = vadd.s32 %v988_v25, %v986_v27 }
0x1698   :  { %v990_v29 = vperm.slane %v989_v28, 0 }
0x169a   :  { %vm991_vm1 = vcmp.eq.s32.totalorder %v2308_v49, %v990_v29 }
0x169b   :  { %v1667_v13 = vsel %vm991_vm1, 1.0, %v1842_v18  ;;  %vm1609_vm1 = vcmask 1041408  }
0x169c   :  { %v994_v30 = vmul.f32 %v1667_v13, %v2482_v0 }
0x169e   :  { %v995_v32 = vsel %vm88_vm3, %v994_v30, 0.0 }
0x169f   :  { %v996_v33 = vrot.slane %v995_v32, 4 }
0x16a1   :  { %v997_v37 = vadd.f32 %v996_v33, %v995_v32 }
0x16a3   :  { %v998_v39 = vrot.slane %v997_v37, 2 }
0x16a5   :  { %v999_v41 = vadd.f32 %v998_v39, %v997_v37 }
0x16a7   :  { %v1000_v43 = vrot.slane %v999_v41, 1 }
0x16a9   :  { %v1001_v59 = vadd.f32 %v1000_v43, %v999_v41 }
0x16ab   :  { %v1025_v9 = vadd.f32 %v1024_v60, %v1001_v59 }
0x16ad   :  { %v1027_v26 = vperm.slane %v1025_v9, 0 }
0x16af   :  { %v1028_v10 = vadd.f32 %v1027_v26, %v784_v62 }
0x16b1   :  { %v1032_v44 = vmul.f32 %v2503_v52, %v1028_v10 }
0x16b3   :  { %v1033_v11 = vsel %vm88_vm3, %v1032_v44, 0.0 }
0x16b4   :  { %1034 = vadd.xlane.f32.xlu2 %v1033_v11  ;;  %v1110_v11 = vpop.f32.mrf.mxu2 }
0x1727   :  { %v1035_v15 = vpop.xlane.xlu2 %1034 }
0x1728   :  { %v1039_v19 = vadd.f32 %v2507_v35, %v1035_v15 }
0x172a   :  { %1757 = vtanh.f32 %v1039_v19 }
0x1730   :  { %v1758_v46 = vpop.eup %1757 }
0x1731   :  { %v1042_v22 = vsel %vm1041_vm4, %v1758_v46, -1e+30  ;;  %vm1613_vm4 = vcmask 60416  }
0x1732   :  { %v1044_v47 = vsel %vm1043_vm5, %v1042_v22, -inf }
0x1733   :  { %v1045_v48 = vrot.slane %v1044_v47, 4 }
0x1735   :  { %v1046_v7 = vmax.f32 %v1044_v47, %v1045_v48 }
0x1737   :  { %v1047_v23 = vrot.slane %v1046_v7, 2 }
0x1739   :  { %v1048_v24 = vmax.f32 %v1046_v7, %v1047_v23 }
0x173b   :  { %v1049_v25 = vrot.slane %v1048_v24, 1 }
0x173d   :  { %v1050_v27 = vmax.f32 %v1048_v24, %v1049_v25 }
0x173f   :  { %v1051_v28 = vsub.f32 %v1758_v46, %v1050_v27 }
0x1741   :  { %v1052_v29 = vmul.f32 1.442695, %v1051_v28 }
0x1743   :  { %1759 = vpow2.f32 %v1052_v29 }
0x1749   :  { %v1760_v13 = vpop.eup %1759 }
0x174a   :  { %v1054_v30 = vmul.f32 %v1760_v13, %v1669_v20 }
0x174c   :  { %v1055_v31 = vsel %vm1043_vm5, %v1054_v30, 0.0 }
0x174d   :  { %v1056_v21 = vrot.slane %v1055_v31, 4 }
0x174f   :  { %v1057_v32 = vadd.f32 %v1056_v21, %v1055_v31 }
0x1751   :  { %v1058_v33 = vrot.slane %v1057_v32, 2 }
0x1753   :  { %v1059_v34 = vadd.f32 %v1058_v33, %v1057_v32 }
0x1755   :  { %v1060_v36 = vrot.slane %v1059_v34, 1 }
0x1757   :  { %v1061_v37 = vadd.f32 %v1060_v36, %v1059_v34 }
0x1759   :  { %v1062_v38 = vmax.f32 %v1061_v37, 1e-30 }
0x175b   :  { %1761 = vrcp.f32 %v1062_v38 }
0x1761   :  { %v1762_v39 = vpop.eup %1761 }
0x1762   :  { %v1064_v41 = vmul.f32 %v1762_v39, %v1054_v30 }
0x1764   :  { %1067 = vperm.xlu0 %1696, %v1064_v41  }
0x17d6   :  { %v1068_v43 = vpop.permute.xlu0 %1067 }
0x17d7   :  { %v1085_v57 = vmul.f32 %v2333_v16, %v1068_v43 }
0x17d9   :  { %v1086_v59 = vsel %vm88_vm3, %v1085_v57, 0.0  ;;  %v786_v57 = vpop.f32.mrf.mxu0 }
0x17da   :  { %v1087_v60 = vrot.slane %v1086_v59, 4 }
0x17dc   :  { %v1088_v62 = vadd.f32 %v1087_v60, %v1086_v59 }
0x17de   :  { %v1089_v9 = vrot.slane %v1088_v62, 2 }
0x17e0   :  { %v1090_v26 = vadd.f32 %v1089_v9, %v1088_v62  ;;  %v787_v62 = vadd.f32 %v786_v57, %v2497_v56 }
0x17e2   :  { %v1091_v10 = vrot.slane %v1090_v26, 1 }
0x17e4   :  { %v1092_v44 = vadd.f32 %v1091_v10, %v1090_v26 }
0x17e6   :  { %1672 = vmatmul.msk.f32.vlgmr.msrb.gmra.mxu3 %vm88_vm3, %v1092_v44 }
0x17e7   :  { %1440 = vmatpush.msrb.mxu3 %v2363_v2 }
0x17e9   :  { %1441 = vmatpush.msrb.mxu3 %v2375_v50 }
0x17eb   :  { %1442 = vmatpush.msrb.mxu3 %v2385_v53 }
0x17ed   :  { %1443 = vmatpush.msrb.mxu3 %v2398_v55 }
0x1869   :  { %v1133_v16 = vpop.f32.mrf.mxu3 }
0x186a   :  { %v1134_v5 = vadd.f32 %v1133_v16, %v1110_v11  ;;  %v1217_v16 = vstv %s1675_s10 }
0x186b   :  { %vm1218_vm9 = vcmp.lt.s32.totalorder %v2308_v49, %v1217_v16 }
0x186c   :  { %v1136_v14 = vadd.f32 %v1134_v5, %v2346_v63 }
0x186e   :  { %1763 = vtanh.f32 %v1136_v14  ;;  %v1137_v19 = vmul.f32 0.5, %v1136_v14 }
0x1870   :  { %1765 = vtanh.f32 %v1137_v19 }
0x1874   :  { %v1764_v15 = vpop.eup %1763 }
0x1875   :  { %1144 = vrot.lane.b32.xlu1 %v1764_v15, %s1843_s29  ;;  %v1676_v15 = vsel %vm1218_vm9, 1.0, %v1842_v18 }
0x1876   :  { %v1766_v20 = vpop.eup %1765  ;;  %vm1249_vm10 = vcmp.gt.f32.partialorder %v1676_v15, 0.0 }
0x1877   :  { %v1139_v46 = vadd.f32 1.0, %v1766_v20 }
0x1879   :  { %v1140_v2 = vmul.f32 0.5, %v1139_v46 }
0x187b   :  { %v1142_v53 = vmul.f32 %v1140_v2, %v2351_v40 }
0x18e7   :  { %v1145_v22 = vpop.permute.xlu1 %1144 }
0x18e8   :  { %v1147_v50 = vmul.f32 %v1145_v22, %v1140_v2 }
0x18ea   :  { %1149 = vrot.lane.b32.xlu2 %v1147_v50, %s1844_s30 }
0x1944   :  { %v1150_v55 = vpop.permute.xlu2 %1149 }
0x1945   :  { %v2525_v47 = vadd.f32 %v1150_v55, %v1142_v53 }
0x1947   :  { %1767 = vtanh.f32 %v2525_v47 }
0x194d   :  { %v1768_v48 = vpop.eup %1767 }
0x194e   :  { %1155 = vrot.lane.b32.xlu1 %v1768_v48, %s1843_s29 }
0x19c0   :  { %v1156_v7 = vpop.permute.xlu1 %1155 }
0x19c1   :  { %v1158_v23 = vmul.f32 %v1156_v7, %v1140_v2 }
0x19c3   :  { %1160 = vrot.lane.b32.xlu2 %v1158_v23, %s1844_s30 }
0x1a1d   :  { %v1161_v24 = vpop.permute.xlu2 %1160 }
0x1a1e   :  { %1673 = vmatmul.msk.f32.vlgmr.msra.gmra.mxu1 %vm88_vm3, %v1161_v24  ;;  %1677 = vmatmul.msk.f32.vlgmr.msra.gmra.mxu2 %vm88_vm3, %v1161_v24 }
0x1a1f   :  { %1678 = vmatmul.msk.f32.vlgmr.msra.gmra.mxu3 %vm88_vm3, %v1161_v24  ;;  %1542 = vmatpush.msra.mxu1 %v2262_v6 }
0x1a20   :  { %1590 = vmatpush.msra.mxu2 %v2358_v42 }
0x1a21   :  { %1543 = vmatpush.msra.mxu1 %v2268_v45 }
0x1a22   :  { %1591 = vmatpush.msra.mxu2 %v2368_v4 }
0x1a23   :  { %1544 = vmatpush.msra.mxu1 %v2274_v1 }
0x1a24   :  { %1592 = vmatpush.msra.mxu2 %v2380_v51 }
0x1a25   :  { %1545 = vmatpush.msra.mxu1 %v2285_v3 }
0x1a26   :  { %1593 = vmatpush.msra.mxu2 %v2393_v54 }
0x1a9b   :  { %v1181_v40 = vpop.f32.mrf.mxu1 }
0x1a9c   :  { %v2542_v25 = vadd.f32 %v1181_v40, %v2434_v58 }
0x1a9e   :  { %v1184_v6 = vsel %vm969_vm14, %v2542_v25, -inf }
0x1a9f   :  { %1185 = vmax.xlane.f32.xlu1 %v1184_v6 }
0x1aa1   :  { %v1238_v60 = vpop.f32.mrf.mxu2 }
0x1b12   :  { %v1186_v42 = vpop.xlane.xlu1 %1185 }
0x1b13   :  { %vm1187_vm6 = vcmp.ge.f32.partialorder %v2542_v25, %v1186_v42 }
0x1b14   :  { %v1188_v45 = vsel %vm1187_vm6, %v2442_v61, 8 }
0x1b15   :  { %v1189_v1 = vsel %vm969_vm14, %v1188_v45, 2147483647 }
0x1b16   :  { %v1191_v4 = vshra.s32 %v1189_v1, 16  ;;  %v1190_v3 = vand.u32 65535, %v1189_v1 }
0x1b18   :  { %v1193_v51 = vcvt.s32.f32 %v1191_v4  ;;  %v1192_v27 = vcvt.s32.f32 %v1190_v3 }
0x1b1a   :  { %1194 = vmin.xlane.f32.xlu2 %v1193_v51 }
0x1b8d   :  { %v1195_v54 = vpop.xlane.xlu2 %1194 }
0x1b8e   :  { %vm1196_vm7 = vcmp.eq.f32.partialorder %v1193_v51, %v1195_v54  ;;  %v1201_v29 = vcvt.f32.s32 %v1195_v54 }
0x1b8f   :  { %v1197_v28 = vsel %vm1196_vm7, %v1192_v27, inf }
0x1b90   :  { %1198 = vmin.xlane.f32.xlu0 %v1197_v28  ;;  %v1202_v30 = vshll.u32 %v1201_v29, 16 }
0x1c03   :  { %v1199_v13 = vpop.xlane.xlu0 %1198 }
0x1c04   :  { %v1200_v31 = vcvt.f32.s32 %v1199_v13 }
0x1c06   :  { %v1203_v21 = vadd.s32 %v1202_v30, %v1200_v31 }
0x1c08   :  { %v1204_v32 = vperm.slane %v1203_v21, 0 }
0x1c0a   :  { %vm1205_vm8 = vcmp.eq.s32.totalorder %v2308_v49, %v1204_v32 }
0x1c0b   :  { %v1674_v33 = vsel %vm1205_vm8, 1.0, %v1842_v18 }
0x1c0c   :  { %v1208_v34 = vmul.f32 %v1674_v33, %v2482_v0 }
0x1c0e   :  { %v1209_v36 = vsel %vm88_vm3, %v1208_v34, 0.0 }
0x1c0f   :  { %v1210_v37 = vrot.slane %v1209_v36, 4 }
0x1c11   :  { %v1211_v38 = vadd.f32 %v1210_v37, %v1209_v36  ;;  %v1317_v37 = vpop.f32.mrf.mxu3 }
0x1c13   :  { %v1212_v39 = vrot.slane %v1211_v38, 2 }
0x1c15   :  { %v1213_v41 = vadd.f32 %v1212_v39, %v1211_v38 }
0x1c17   :  { %v1214_v43 = vrot.slane %v1213_v41, 1 }
0x1c19   :  { %v1215_v59 = vadd.f32 %v1214_v43, %v1213_v41 }
0x1c1b   :  { %v1239_v9 = vadd.f32 %v1238_v60, %v1215_v59 }
0x1c1d   :  { %v1241_v26 = vperm.slane %v1239_v9, 0 }
0x1c1f   :  { %v1242_v10 = vadd.f32 %v1241_v26, %v787_v62 }
0x1c21   :  { %v1243_v44 = vmul.f32 %v2503_v52, %v1242_v10 }
0x1c23   :  { %v1244_v11 = vsel %vm88_vm3, %v1243_v44, 0.0 }
0x1c24   :  { %1245 = vadd.xlane.f32.xlu1 %v1244_v11 }
0x1c97   :  { %v1246_v5 = vpop.xlane.xlu1 %1245 }
0x1c98   :  { %v1247_v14 = vadd.f32 %v2507_v35, %v1246_v5 }
0x1c9a   :  { %1769 = vtanh.f32 %v1247_v14 }
0x1ca0   :  { %v1770_v19 = vpop.eup %1769 }
0x1ca1   :  { %v1250_v20 = vsel %vm1249_vm10, %v1770_v19, -1e+30 }
0x1ca2   :  { %v1251_v46 = vsel %vm1043_vm5, %v1250_v20, -inf }
0x1ca3   :  { %v1252_v2 = vrot.slane %v1251_v46, 4 }
0x1ca5   :  { %v1253_v22 = vmax.f32 %v1251_v46, %v1252_v2 }
0x1ca7   :  { %v1254_v50 = vrot.slane %v1253_v22, 2 }
0x1ca9   :  { %v1255_v53 = vmax.f32 %v1253_v22, %v1254_v50 }
0x1cab   :  { %v1256_v55 = vrot.slane %v1255_v53, 1 }
0x1cad   :  { %v1257_v48 = vmax.f32 %v1255_v53, %v1256_v55 }
0x1caf   :  { %v1258_v7 = vsub.f32 %v1770_v19, %v1257_v48 }
0x1cb1   :  { %v1259_v23 = vmul.f32 1.442695, %v1258_v7 }
0x1cb3   :  { %1771 = vpow2.f32 %v1259_v23 }
0x1cb9   :  { %v1772_v24 = vpop.eup %1771 }
0x1cba   :  { %v1261_v40 = vmul.f32 %v1772_v24, %v1676_v15 }
0x1cbc   :  { %v1262_v6 = vsel %vm1043_vm5, %v1261_v40, 0.0 }
0x1cbd   :  { %v1263_v42 = vrot.slane %v1262_v6, 4 }
0x1cbf   :  { %v1264_v45 = vadd.f32 %v1263_v42, %v1262_v6 }
0x1cc1   :  { %v1265_v1 = vrot.slane %v1264_v45, 2 }
0x1cc3   :  { %v1266_v4 = vadd.f32 %v1265_v1, %v1264_v45 }
0x1cc5   :  { %v1267_v51 = vrot.slane %v1266_v4, 1 }
0x1cc7   :  { %v1268_v3 = vadd.f32 %v1267_v51, %v1266_v4 }
0x1cc9   :  { %v1269_v54 = vmax.f32 %v1268_v3, 1e-30 }
0x1ccb   :  { %1773 = vrcp.f32 %v1269_v54 }
0x1cd1   :  { %v1774_v27 = vpop.eup %1773 }
0x1cd2   :  { %v1271_v28 = vmul.f32 %v1774_v27, %v1261_v40 }
0x1cd4   :  { %1274 = vperm.xlu2 %1697, %v1271_v28  }
0x1d2e   :  { %v1275_v29 = vpop.permute.xlu2 %1274 }
0x1d2f   :  { %v1292_v13 = vmul.f32 %v2336_v17, %v1275_v29 }
0x1d31   :  { %v1293_v30 = vsel %vm88_vm3, %v1292_v13, 0.0  ;;  %v789_v13 = vpop.f32.mrf.mxu0 }
0x1d32   :  { %v1294_v31 = vrot.slane %v1293_v30, 4 }
0x1d34   :  { %v1295_v21 = vadd.f32 %v1294_v31, %v1293_v30  ;;  %v790_v31 = vadd.f32 %v789_v13, %v2497_v56 }
0x1d36   :  { %v1296_v32 = vrot.slane %v1295_v21, 2 }
0x1d38   :  { %v1297_v33 = vadd.f32 %v1296_v32, %v1295_v21 }
0x1d3a   :  { %v1298_v34 = vrot.slane %v1297_v33, 1 }
0x1d3c   :  { %v1299_v36 = vadd.f32 %v1298_v34, %v1297_v33 }
0x1d3e   :  { %1679 = vmatmul.msk.f32.vlgmr.msrb.gmra.mxu1 %vm88_vm3, %v1299_v36 }
0x1dbb   :  { %v1340_v38 = vpop.f32.mrf.mxu1 }
0x1dbc   :  { %v1341_v39 = vadd.f32 %v1340_v38, %v1317_v37 }
0x1dbe   :  { %v1343_v41 = vadd.f32 %v1341_v39, %v2346_v63 }
0x1dc0   :  { %1775 = vtanh.f32 %v1343_v41  ;;  %v1344_v17 = vmul.f32 0.5, %v1343_v41 }
0x1dc2   :  { %1777 = vtanh.f32 %v1344_v17 }
0x1dc6   :  { %v1776_v43 = vpop.eup %1775 }
0x1dc7   :  { %1351 = vrot.lane.b32.xlu0 %v1776_v43, %s1843_s29 }
0x1dc8   :  { %v1778_v57 = vpop.eup %1777 }
0x1dc9   :  { %v1346_v59 = vadd.f32 1.0, %v1778_v57 }
0x1dcb   :  { %v1347_v60 = vmul.f32 0.5, %v1346_v59 }
0x1dcd   :  { %v1349_v26 = vmul.f32 %v1347_v60, %v2525_v47 }
0x1e39   :  { %v1352_v62 = vpop.permute.xlu0 %1351 }
0x1e3a   :  { %v1354_v9 = vmul.f32 %v1352_v62, %v1347_v60 }
0x1e3c   :  { %1356 = vrot.lane.b32.xlu1 %v1354_v9, %s1844_s30 }
0x1eae   :  { %v1357_v10 = vpop.permute.xlu1 %1356 }
0x1eaf   :  { %v2568_v44 = vadd.f32 %v1357_v10, %v1349_v26 }
0x1eb1   :  { %1779 = vtanh.f32 %v2568_v44 }
0x1eb7   :  { %v1780_v11 = vpop.eup %1779 }
0x1eb8   :  { %1362 = vrot.lane.b32.xlu0 %v1780_v11, %s1843_s29 }
0x1f2a   :  { %v1363_v16 = vpop.permute.xlu0 %1362 }
0x1f2b   :  { %v1365_v5 = vmul.f32 %v1363_v16, %v1347_v60 }
0x1f2d   :  { %1367 = vrot.lane.b32.xlu2 %v1365_v5, %s1844_s30 }
0x1f87   :  { %v1368_v14 = vpop.permute.xlu2 %1367 }
0x1f88   :  { %1680 = vmatmul.msk.f32.vlgmr.msrb.gmra.mxu2 %vm88_vm3, %v1368_v14  ;;  %1684 = vmatmul.msk.f32.vlgmr.msrb.gmra.mxu3 %vm88_vm3, %v1368_v14 }
0x1f89   :  { %1685 = vmatmul.msk.f32.vlgmr.msrb.gmra.mxu0 %vm88_vm3, %v1368_v14 }
0x200b   :  { %v1388_v47 = vpop.f32.mrf.mxu2  ;;  %v1445_v30 = vpop.f32.mrf.mxu3 }
0x200c   :  { %v2577_v15 = vadd.f32 %v1388_v47, %v2434_v58 }
0x200e   :  { %v1391_v19 = vsel %vm969_vm14, %v2577_v15, -inf }
0x200f   :  { %1392 = vmax.xlane.f32.xlu1 %v1391_v19 }
0x2082   :  { %v1393_v20 = vpop.xlane.xlu1 %1392 }
0x2083   :  { %vm1394_vm11 = vcmp.ge.f32.partialorder %v2577_v15, %v1393_v20 }
0x2084   :  { %v1395_v46 = vsel %vm1394_vm11, %v2442_v61, 8 }
0x2085   :  { %v1396_v2 = vsel %vm969_vm14, %v1395_v46, 2147483647 }
0x2086   :  { %v1398_v22 = vshra.s32 %v1396_v2, 16  ;;  %v1397_v53 = vand.u32 65535, %v1396_v2 }
0x2088   :  { %v1400_v50 = vcvt.s32.f32 %v1398_v22  ;;  %v1399_v48 = vcvt.s32.f32 %v1397_v53 }
0x208a   :  { %1401 = vmin.xlane.f32.xlu0 %v1400_v50 }
0x20fd   :  { %v1402_v55 = vpop.xlane.xlu0 %1401 }
0x20fe   :  { %vm1403_vm12 = vcmp.eq.f32.partialorder %v1400_v50, %v1402_v55  ;;  %v1408_v23 = vcvt.f32.s32 %v1402_v55 }
0x20ff   :  { %v1404_v7 = vsel %vm1403_vm12, %v1399_v48, inf }
0x2100   :  { %1405 = vmin.xlane.f32.xlu2 %v1404_v7  ;;  %v1409_v40 = vshll.u32 %v1408_v23, 16 }
0x2173   :  { %v1406_v24 = vpop.xlane.xlu2 %1405 }
0x2174   :  { %v1407_v6 = vcvt.f32.s32 %v1406_v24 }
0x2176   :  { %v1410_v42 = vadd.s32 %v1409_v40, %v1407_v6  ;;  %v1524_v40 = vpop.f32.mrf.mxu0 }
0x2178   :  { %v1411_v45 = vperm.slane %v1410_v42, 0 }
0x217a   :  { %vm1412_vm13 = vcmp.eq.s32.totalorder %v2308_v49, %v1411_v45 }
0x217b   :  { %v1681_v61 = vsel %vm1412_vm13, 1.0, %v1842_v18 }
0x217c   :  { %v1415_v1 = vmul.f32 %v1681_v61, %v2482_v0  ;;  %v1424_v0 = vstv %s1682_s16 }
0x217d   :  { %vm1425_vm14 = vcmp.lt.s32.totalorder %v2308_v49, %v1424_v0 }
0x217e   :  { %v1416_v4 = vsel %vm88_vm3, %v1415_v1, 0.0  ;;  %v1683_v39 = vsel %vm1425_vm14, 1.0, %v1842_v18 }
0x217f   :  { %v1417_v51 = vrot.slane %v1416_v4, 4  ;;  %vm1456_vm15 = vcmp.gt.f32.partialorder %v1683_v39, 0.0 }
0x2181   :  { %v1418_v3 = vadd.f32 %v1417_v51, %v1416_v4 }
0x2183   :  { %v1419_v54 = vrot.slane %v1418_v3, 2 }
0x2185   :  { %v1420_v27 = vadd.f32 %v1419_v54, %v1418_v3 }
0x2187   :  { %v1421_v28 = vrot.slane %v1420_v27, 1 }
0x2189   :  { %v1422_v29 = vadd.f32 %v1421_v28, %v1420_v27 }
0x218b   :  { %v1446_v21 = vadd.f32 %v1445_v30, %v1422_v29 }
0x218d   :  { %v1448_v32 = vperm.slane %v1446_v21, 0  ;;  %v1599_v21 = vrot.slane %v2542_v25, 7 }
0x218f   :  { %v1449_v33 = vadd.f32 %v1448_v32, %v790_v31  ;;  %v1602_v32 = vrot.slane %v2577_v15, 6 }
0x2191   :  { %v1450_v34 = vmul.f32 %v2503_v52, %v1449_v33 }
0x2193   :  { %v1451_v36 = vsel %vm88_vm3, %v1450_v34, 0.0 }
0x2194   :  { %1452 = vadd.xlane.f32.xlu1 %v1451_v36  ;;  %v1608_v36 = vsel %vm1607_vm0, %v2437_v12, %v1599_v21 }
0x2195   :  { %v1610_v0 = vsel %vm1609_vm1, %v1608_v36, %v1602_v32 }
0x2207   :  { %v1453_v37 = vpop.xlane.xlu1 %1452 }
0x2208   :  { %v1454_v38 = vadd.f32 %v2507_v35, %v1453_v37 }
0x220a   :  { %1781 = vtanh.f32 %v1454_v38 }
0x2210   :  { %v1782_v56 = vpop.eup %1781 }
0x2211   :  { %v1457_v41 = vsel %vm1456_vm15, %v1782_v56, -1e+30 }
0x2212   :  { %v1458_v43 = vsel %vm1043_vm5, %v1457_v41, -inf }
0x2213   :  { %v1459_v17 = vrot.slane %v1458_v43, 4 }
0x2215   :  { %v1460_v52 = vmax.f32 %v1458_v43, %v1459_v17 }
0x2217   :  { %v1461_v57 = vrot.slane %v1460_v52, 2 }
0x2219   :  { %v1462_v59 = vmax.f32 %v1460_v52, %v1461_v57 }
0x221b   :  { %v1463_v60 = vrot.slane %v1462_v59, 1 }
0x221d   :  { %v1464_v62 = vmax.f32 %v1462_v59, %v1463_v60 }
0x221f   :  { %v1465_v9 = vsub.f32 %v1782_v56, %v1464_v62 }
0x2221   :  { %v1466_v26 = vmul.f32 1.442695, %v1465_v9 }
0x2223   :  { %1783 = vpow2.f32 %v1466_v26 }
0x2229   :  { %v1784_v35 = vpop.eup %1783 }
0x222a   :  { %v1468_v10 = vmul.f32 %v1784_v35, %v1683_v39 }
0x222c   :  { %v1469_v49 = vsel %vm1043_vm5, %v1468_v10, 0.0 }
0x222d   :  { %v1470_v11 = vrot.slane %v1469_v49, 4 }
0x222f   :  { %v1471_v18 = vadd.f32 %v1470_v11, %v1469_v49 }
0x2231   :  { %v1472_v16 = vrot.slane %v1471_v18, 2 }
0x2233   :  { %v1473_v5 = vadd.f32 %v1472_v16, %v1471_v18 }
0x2235   :  { %v1474_v14 = vrot.slane %v1473_v5, 1 }
0x2237   :  { %v1475_v47 = vadd.f32 %v1474_v14, %v1473_v5 }
0x2239   :  { %v1476_v19 = vmax.f32 %v1475_v47, 1e-30 }
0x223b   :  { %1785 = vrcp.f32 %v1476_v19 }
0x2241   :  { %v1786_v20 = vpop.eup %1785 }
0x2242   :  { %v1478_v46 = vmul.f32 %v1786_v20, %v1468_v10 }
0x2244   :  { %1481 = vperm.xlu0 %1696, %v1478_v46  }
0x22b6   :  { %v1482_v2 = vpop.permute.xlu0 %1481 }
0x22b7   :  { %v1499_v22 = vmul.f32 %v2339_v8, %v1482_v2 }
0x22b9   :  { %v1500_v50 = vsel %vm88_vm3, %v1499_v22, 0.0 }
0x22ba   :  { %v1501_v53 = vrot.slane %v1500_v50, 4 }
0x22bc   :  { %v1502_v55 = vadd.f32 %v1501_v53, %v1500_v50 }
0x22be   :  { %v1503_v48 = vrot.slane %v1502_v55, 2 }
0x22c0   :  { %v1504_v7 = vadd.f32 %v1503_v48, %v1502_v55 }
0x22c2   :  { %v1505_v23 = vrot.slane %v1504_v7, 1 }
0x22c4   :  { %v1506_v24 = vadd.f32 %v1505_v23, %v1504_v7 }
0x22c6   :  { %1686 = vmatmul.msk.f32.vlgmr.msra.gmra.mxu1 %vm88_vm3, %v1506_v24 }
0x2343   :  { %v1547_v6 = vpop.f32.mrf.mxu1 }
0x2344   :  { %v1548_v42 = vadd.f32 %v1547_v6, %v1524_v40 }
0x2346   :  { %v1550_v45 = vadd.f32 %v1548_v42, %v2346_v63 }
0x2348   :  { %1787 = vtanh.f32 %v1550_v45  ;;  %v1551_v8 = vmul.f32 0.5, %v1550_v45 }
0x234a   :  { %1789 = vtanh.f32 %v1551_v8 }
0x234e   :  { %v1788_v61 = vpop.eup %1787 }
0x234f   :  { %1558 = vrot.lane.b32.xlu2 %v1788_v61, %s1843_s29 }
0x2350   :  { %v1790_v1 = vpop.eup %1789 }
0x2351   :  { %v1553_v4 = vadd.f32 1.0, %v1790_v1 }
0x2353   :  { %v1554_v51 = vmul.f32 0.5, %v1553_v4 }
0x2355   :  { %v1556_v27 = vmul.f32 %v1554_v51, %v2568_v44 }
0x23a9   :  { %v1559_v3 = vpop.permute.xlu2 %1558 }
0x23aa   :  { %v1561_v54 = vmul.f32 %v1559_v3, %v1554_v51 }
0x23ac   :  { %1563 = vrot.lane.b32.xlu1 %v1561_v54, %s1844_s30 }
0x241e   :  { %v1564_v28 = vpop.permute.xlu1 %1563 }
0x241f   :  { %v1566_v29 = vadd.f32 %v1564_v28, %v1556_v27 }
0x2421   :  { %1791 = vtanh.f32 %v1566_v29 }
0x2427   :  { %v1792_v13 = vpop.eup %1791 }
0x2428   :  { %1569 = vrot.lane.b32.xlu0 %v1792_v13, %s1843_s29  ;;  %s1846_s29 = smov [#allocation7]  }
0x249a   :  { %v1570_v63 = vpop.permute.xlu0 %1569 }
0x249b   :  { %v1572_v30 = vmul.f32 %v1570_v63, %v1554_v51 }
0x249d   :  { %1574 = vrot.lane.b32.xlu2 %v1572_v30, %s1844_s30  ;;  %s1633_s30 = sshll.u32 %s1846_s29, 4  ;;  %s1634_s30 = int_to_ptr.vmem [resolvable:$true] %s1633_s30 }
0x24f7   :  { %v1575_v31 = vpop.permute.xlu2 %1574 }
0x24f8   :  { %1687 = vmatmul.msk.f32.vlgmr.msra.gmra.mxu2 %vm88_vm3, %v1575_v31 }
0x257b   :  { %v1595_v33 = vpop.f32.mrf.mxu2 }
0x257c   :  { %v1596_v44 = vadd.f32 %v1595_v33, %v2434_v58 }
0x257e   :  { %v1605_v34 = vrot.slane %v1596_v44, 5 }
0x2580   :  { %v1612_v37 = vsel %vm1611_vm2, %v1610_v0, %v1605_v34 }
0x2581   :  { %v1614_v38 = vsel %vm1613_vm4, %v1612_v37, -inf }
0x2582   :  { %1615 = vmax.xlane.f32.xlu0 %v1614_v38 }
0x25f5   :  { %v1616_v39 = vpop.xlane.xlu0 %1615 }
0x25f6   :  { %v1617_v56 = vsub.f32 %v1612_v37, %v1616_v39 }
0x25f8   :  { %v1618_v25 = vmul.f32 1.442695, %v1617_v56 }
0x25fa   :  { %1793 = vpow2.f32 %v1618_v25 }
0x2600   :  { %v1794_v15 = vpop.eup %1793 }
0x2601   :  { %v1620_v41 = vsel %vm1613_vm4, %v1794_v15, 0.0 }
0x2602   :  { %1621 = vadd.xlane.f32.xlu1 %v1620_v41 }
0x2675   :  { %v1622_v58 = vpop.xlane.xlu1 %1621 }
0x2676   :  { %1795 = vlog2.f32 %v1622_v58 }
0x267c   :  { %v1796_v43 = vpop.eup %1795 }
0x267d   :  { %v1624_v17 = vmul.f32 0.6931472, %v1796_v43 }
0x267f   :  { %v1625_v12 = vadd.f32 %v1624_v17, %v1616_v39 }
0x2681   :  { %v1626_v52 = vsub.f32 %v1612_v37, %v1625_v12 }
0x2683   :  { %1627 = vst.msk [vmem:[#allocation7] sm:$0xf] %vm1613_vm4, %v1626_v52 }
0x2684   :  { %1638 = dma.vmem_to_hbm [thread:$0]  %s1634_s30, 64, %s1636_s14, [#allocation5]  }
0x2685   :  { %1839 = dma.done.wait [#allocation5], 64  }
0x2686   :  { %1840 = vsyncadd [#allocation5], 4294967232 }
0x2687   :  { %1643 = vsyncpa [#allocation5], 1 }
0x2688   :  { %1644 = vsyncpa [#allocation6], 1 }

</bundles_post_ra>
